<compile_context>
chip_gen: v7x
topology: tpu7x:2x2x1
jax: 0.10.0
libtpu: 0.0.40
codegen_flags: <defaults>
</compile_context>

<pallas_src>
import jax
import jax.numpy as jnp
from jax.experimental import pallas as pl
from jax.experimental.pallas import tpu as pltpu

_BN_EPS = 1e-5


# ----------------------------------------------------------------------------
# Fused ResNetBlock kernel: one grid step per block of Bt batch elements.
# ----------------------------------------------------------------------------
def _resnet_block_kernel(x_ref, s1_ref, t1_ref, band1_ref,
                         s2_ref, t2_ref, band2_ref, out_ref):
    # x_ref     : [Bt, H, W*C]   activation block, NHWC flattened over (W, C), f32
    # s*/t*     : [1, W*C]       folded BatchNorm scale / shift, tiled over W, f32
    # band*_ref : [3*W*C, W*C]   banded-Toeplitz conv weights, ky-stacked along K, bf16
    # out_ref   : [Bt, H, W*C]
    bt, H, WC = x_ref.shape
    M = bt * H

    # Row-within-element index -> masks that zero the conv row halo at the first /
    # last row of every batch element (computed once, reused by both convs).
    row = jax.lax.broadcasted_iota(jnp.int32, (bt, H, 1), 1)
    first_row = row == 0
    last_row = row == H - 1

    def conv3x3(a, band_ref):
        # 3x3 "SAME" conv as ONE MXU matmul: [M, 3*WC] (bf16) @ [3*WC, WC] (bf16)
        # with f32 accumulation.  The kx taps and their zero padding are already
        # folded into the banded weights; the three ky taps are the row-shifted
        # views built with XLU rolls + per-element boundary masks (no unaligned
        # concat/slice copies).
        a2 = a.reshape(M, WC)
        dn = pltpu.roll(a2, 1, axis=0).reshape(bt, H, WC)       # a[h-1]  (ky = 0)
        up = pltpu.roll(a2, M - 1, axis=0).reshape(bt, H, WC)   # a[h+1]  (ky = 2)
        dn = jnp.where(first_row, 0.0, dn)                      # zero halo at h = 0
        up = jnp.where(last_row, 0.0, up)                       # zero halo at h = H-1
        lhs = jnp.concatenate(
            [dn.astype(jnp.bfloat16), a.astype(jnp.bfloat16),
             up.astype(jnp.bfloat16)], axis=2).reshape(M, 3 * WC)
        acc = jnp.dot(lhs, band_ref[...], preferred_element_type=jnp.float32)
        return acc.reshape(bt, H, WC)

    x = x_ref[...].astype(jnp.float32)
    s1 = s1_ref[...].reshape(1, 1, WC)
    t1 = t1_ref[...].reshape(1, 1, WC)
    s2 = s2_ref[...].reshape(1, 1, WC)
    t2 = t2_ref[...].reshape(1, 1, WC)

    h = x * s1 + t1                      # bn1 (folded, inference mode)
    h = h * jax.nn.sigmoid(h)            # swish
    h = conv3x3(h, band1_ref)            # conv1 (3x3, pad 1, no bias)
    h = h * s2 + t2                      # bn2 (folded)
    h = h * jax.nn.sigmoid(h)            # swish
    h = conv3x3(h, band2_ref)            # conv2 (3x3, pad 1, no bias)
    out_ref[...] = h + x                 # identity shortcut


# ----------------------------------------------------------------------------
# One-time (per weight set) host-side parameter folding -- no activation-sized work.
# ----------------------------------------------------------------------------
def _make_band(w_hwio, W):
    """Fold the kx taps (and their zero padding) of a 3x3 HWIO conv weight into a
    banded-Toeplitz matrix, ky-stacked along K: [3*W*Cin, W*Cout], bf16."""
    kh, kw, _, _ = w_hwio.shape
    bands = []
    for ky in range(kh):
        b = sum(jnp.kron(jnp.eye(W, W, k=1 - kx, dtype=jnp.float32),
                         w_hwio[ky, kx].astype(jnp.float32))
                for kx in range(kw))
        bands.append(b)
    return jnp.concatenate(bands, axis=0).astype(jnp.bfloat16)   # [3*W*C, W*C]


def _fold_bn(bn, W):
    # Inference-mode BatchNorm folded to per-channel scale/shift, pre-tiled across
    # W so the kernel's [.., W*C] layout needs only an elementwise FMA (f32).
    scale = (bn["gamma"] / jnp.sqrt(bn["var"] + _BN_EPS)).astype(jnp.float32)
    shift = (bn["beta"] - bn["mean"] * scale).astype(jnp.float32)
    return (jnp.tile(scale, W).reshape(1, -1),
            jnp.tile(shift, W).reshape(1, -1))


def prepare_params(params, W):
    """Call once per weight set; returns kernel-layout operands."""
    s1, t1 = _fold_bn(params["bn1"], W)
    s2, t2 = _fold_bn(params["bn2"], W)
    band1 = _make_band(params["w1"], W)
    band2 = _make_band(params["w2"], W)
    return (s1, t1, band1, s2, t2, band2)


def _pick_block_batch(B, H, target_rows=256):
    """Largest divisor of B such that (a) Bt*H rows roughly fill the MXU M
    dimension and (b) at least two grid steps remain (both v7x TensorCores)."""
    best = 1
    for bt in range(1, B + 1):
        if B % bt:
            continue
        if bt * H > max(target_rows, H):
            continue
        if B // bt < min(2, B):
            continue
        best = bt
    return best


# ----------------------------------------------------------------------------
# Jitted forward (NHWC in / NHWC out -- no layout transposes in the hot path).
# ----------------------------------------------------------------------------
@jax.jit
def resnet_block_apply(prep, x_nhwc):
    """ResNetBlock forward (in_channels == out_channels, stride == 1)."""
    # TODO(synk): BatchNorm is applied in inference mode (folded running stats);
    # training-mode batch statistics are not computed in-kernel.
    # TODO(synk): the conv1x1+BN shortcut / stride != 1 path is not implemented
    # (the reference forward is only self-consistent for in==out, stride==1).
    s1, t1, band1, s2, t2, band2 = prep
    B, H, W, C = x_nhwc.shape
    WC = W * C
    # Lane-dense layout guard: W*C must be a multiple of 128, otherwise every
    # vector store becomes a masked partial store (large perf cliff).
    assert WC % 128 == 0, f"W*C = {WC} must be a multiple of 128 for the lane-dense layout"
    assert band1.shape == (3 * WC, WC)

    bt = _pick_block_batch(B, H)
    x = x_nhwc.astype(jnp.float32).reshape(B, H, WC)   # free reshape, no transpose

    # Size the VMEM budget from the actual footprint (double-buffered operands +
    # headroom for in-kernel temporaries) instead of a flat 32 MiB.
    band_bytes = band1.size * band1.dtype.itemsize
    act_bytes = bt * H * WC * 4
    vmem_limit = int(min(100 * 2**20,
                         max(16 * 2**20,
                             2 * (2 * 2 * band_bytes + 2 * 2 * act_bytes + 12 * act_bytes))))

    out = pl.pallas_call(
        _resnet_block_kernel,
        out_shape=jax.ShapeDtypeStruct((B, H, WC), jnp.float32),
        grid=(B // bt,),
        in_specs=[
            pl.BlockSpec((bt, H, WC), lambda b: (b, 0, 0)),    # activation block
            pl.BlockSpec((1, WC), lambda b: (0, 0)),           # bn1 scale
            pl.BlockSpec((1, WC), lambda b: (0, 0)),           # bn1 shift
            # Grid-invariant bands (constant index_map -> fetched once).  For large
            # W*C on v7x, add pipeline_mode=pl.Buffered(1) here to single-buffer.
            pl.BlockSpec((3 * WC, WC), lambda b: (0, 0)),      # conv1 band (bf16)
            pl.BlockSpec((1, WC), lambda b: (0, 0)),           # bn2 scale
            pl.BlockSpec((1, WC), lambda b: (0, 0)),           # bn2 shift
            pl.BlockSpec((3 * WC, WC), lambda b: (0, 0)),      # conv2 band (bf16)
        ],
        out_specs=pl.BlockSpec((bt, H, WC), lambda b: (b, 0, 0)),
        compiler_params=pltpu.CompilerParams(
            dimension_semantics=("parallel",),     # >= 2 steps -> both v7x TCs busy
            vmem_limit_bytes=vmem_limit),
    )(x, s1, t1, band1, s2, t2, band2)

    return out.reshape(B, H, W, C)


# ----------------------------------------------------------------------------
# Pure-JAX reference (exact f32 module semantics, NHWC) for correctness check.
# ----------------------------------------------------------------------------
def _ref_forward_nhwc(params, x_nhwc):
    def bn(v, p):
        return (v - p["mean"]) / jnp.sqrt(p["var"] + _BN_EPS) * p["gamma"] + p["beta"]

    def swish(v):
        return v * jax.nn.sigmoid(v)

    def conv(v, w):
        return jax.lax.conv_general_dilated(
            v, w, (1, 1), "SAME",
            dimension_numbers=("NHWC", "HWIO", "NHWC"),
            precision=jax.lax.Precision.HIGHEST)

    x = x_nhwc.astype(jnp.float32)
    h = conv(swish(bn(x, params["bn1"])), params["w1"])
    h = conv(swish(bn(h, params["bn2"])), params["w2"])
    return h + x


# ----------------------------------------------------------------------------
# Deterministic parameter init (shapes from ResNetBlock.__init__, bias=False).
# ----------------------------------------------------------------------------
def init_params(key, channels):
    C = channels
    ks = jax.random.split(key, 10)
    n = lambda k, shape, s=0.1: (s * jax.random.normal(k, shape)).astype(jnp.float32)

    def bn_params(kg, kb, km, kv):
        return {"gamma": 1.0 + n(kg, (C,)),
                "beta": n(kb, (C,)),
                "mean": n(km, (C,)),
                "var": jnp.abs(n(kv, (C,))) + 1.0}

    return {
        "bn1": bn_params(ks[0], ks[1], ks[2], ks[3]),
        "w1": n(ks[4], (3, 3, C, C)),          # HWIO
        "bn2": bn_params(ks[5], ks[6], ks[7], ks[8]),
        "w2": n(ks[9], (3, 3, C, C)),          # HWIO
    }


if __name__ == "__main__":
    # NHWC activations; W*C = 16*8 = 128 keeps the [.., W*C] slab lane-dense and
    # B = 16 gives M = Bt*H = 128 MXU rows per grid step with 2 parallel steps.
    B, H, W, C = 16, 16, 16, 8
    key = jax.random.PRNGKey(0)
    kx, kp = jax.random.split(key)

    x = jax.random.normal(kx, (B, H, W, C), dtype=jnp.float32)
    params = init_params(kp, C)

    prep = prepare_params(params, W)                       # once per weight set
    out = jax.block_until_ready(resnet_block_apply(prep, x))
    assert out.shape == (B, H, W, C), out.shape

    ref = jax.block_until_ready(_ref_forward_nhwc(params, x))
    max_err = float(jnp.max(jnp.abs(out - ref)))
    mean_err = float(jnp.mean(jnp.abs(out - ref)))
    # bf16 MXU operands with f32 accumulation: drift vs the pure-f32 reference
    # stays well inside these bounds; structural/indexing errors would be O(0.1-1).
    assert max_err < 5e-2 and mean_err < 5e-3, (max_err, mean_err)
    print("KERNEL_OK")
</pallas_src>

<mosaic_0001>
module attributes {stable_mosaic.version = 11 : i64} {
  func.func @_resnet_block_kernel(%arg0: i32, %arg1: memref<8x16x128xf32, #tpu.memory_space<vmem>>, %arg2: memref<1x128xf32, #tpu.memory_space<vmem>>, %arg3: memref<1x128xf32, #tpu.memory_space<vmem>>, %arg4: memref<384x128xbf16, #tpu.memory_space<vmem>>, %arg5: memref<1x128xf32, #tpu.memory_space<vmem>>, %arg6: memref<1x128xf32, #tpu.memory_space<vmem>>, %arg7: memref<384x128xbf16, #tpu.memory_space<vmem>>, %arg8: memref<8x16x128xf32, #tpu.memory_space<vmem>>) attributes {dimension_semantics = [#tpu.dimension_semantics<parallel>], iteration_bounds = array<i64: 2>, scalar_prefetch = 0 : i64, scratch_operands = 0 : i64, tpu.core_type = #tpu.core_type<tc>, window_params = [{transform_indices = @transform_0, window_bounds = array<i64: 8, 16, 128>}, {pipeline_mode = #tpu.pipeline_mode<synchronous>, transform_indices = @transform_1, window_bounds = array<i64: 1, 128>}, {pipeline_mode = #tpu.pipeline_mode<synchronous>, transform_indices = @transform_2, window_bounds = array<i64: 1, 128>}, {pipeline_mode = #tpu.pipeline_mode<synchronous>, transform_indices = @transform_3, window_bounds = array<i64: 384, 128>}, {pipeline_mode = #tpu.pipeline_mode<synchronous>, transform_indices = @transform_4, window_bounds = array<i64: 1, 128>}, {pipeline_mode = #tpu.pipeline_mode<synchronous>, transform_indices = @transform_5, window_bounds = array<i64: 1, 128>}, {pipeline_mode = #tpu.pipeline_mode<synchronous>, transform_indices = @transform_6, window_bounds = array<i64: 384, 128>}, {transform_indices = @transform_7, window_bounds = array<i64: 8, 16, 128>}]} {
    %0 = tpu.iota {dimensions = array<i32: 1>} : vector<8x16x1xi32>
    %c0_i32 = arith.constant 0 : i32
    %1 = vector.broadcast %c0_i32 : i32 to vector<8x16x1xi32>
    %2 = arith.cmpi eq, %0, %1 : vector<8x16x1xi32>
    %c15_i32 = arith.constant 15 : i32
    %3 = vector.broadcast %c15_i32 : i32 to vector<8x16x1xi32>
    %4 = arith.cmpi eq, %0, %3 : vector<8x16x1xi32>
    %c0 = arith.constant 0 : index
    %c0_0 = arith.constant 0 : index
    %c0_1 = arith.constant 0 : index
    %5 = vector.load %arg1[%c0, %c0_0, %c0_1] : memref<8x16x128xf32, #tpu.memory_space<vmem>>, vector<8x16x128xf32>
    %c0_2 = arith.constant 0 : index
    %c0_3 = arith.constant 0 : index
    %6 = vector.load %arg2[%c0_2, %c0_3] : memref<1x128xf32, #tpu.memory_space<vmem>>, vector<1x128xf32>
    %7 = vector.shape_cast %6 : vector<1x128xf32> to vector<1x1x128xf32>
    %c0_4 = arith.constant 0 : index
    %c0_5 = arith.constant 0 : index
    %8 = vector.load %arg3[%c0_4, %c0_5] : memref<1x128xf32, #tpu.memory_space<vmem>>, vector<1x128xf32>
    %9 = vector.shape_cast %8 : vector<1x128xf32> to vector<1x1x128xf32>
    %c0_6 = arith.constant 0 : index
    %c0_7 = arith.constant 0 : index
    %10 = vector.load %arg5[%c0_6, %c0_7] : memref<1x128xf32, #tpu.memory_space<vmem>>, vector<1x128xf32>
    %11 = vector.shape_cast %10 : vector<1x128xf32> to vector<1x1x128xf32>
    %c0_8 = arith.constant 0 : index
    %c0_9 = arith.constant 0 : index
    %12 = vector.load %arg6[%c0_8, %c0_9] : memref<1x128xf32, #tpu.memory_space<vmem>>, vector<1x128xf32>
    %13 = vector.shape_cast %12 : vector<1x128xf32> to vector<1x1x128xf32>
    %14 = vector.broadcast %7 : vector<1x1x128xf32> to vector<8x16x128xf32>
    %15 = arith.mulf %5, %14 : vector<8x16x128xf32>
    %16 = vector.broadcast %9 : vector<1x1x128xf32> to vector<8x16x128xf32>
    %17 = arith.addf %15, %16 : vector<8x16x128xf32>
    %18 = arith.negf %17 : vector<8x16x128xf32>
    %19 = math.exp %18 : vector<8x16x128xf32>
    %cst = arith.constant 1.000000e+00 : f32
    %20 = vector.broadcast %cst : f32 to vector<8x16x128xf32>
    %21 = arith.addf %20, %19 : vector<8x16x128xf32>
    %22 = arith.divf %20, %21 : vector<8x16x128xf32>
    %23 = arith.mulf %17, %22 : vector<8x16x128xf32>
    %24 = vector.shape_cast %23 : vector<8x16x128xf32> to vector<128x128xf32>
    %c1_i32 = arith.constant 1 : i32
    %25 = tpu.dynamic_rotate %24 by %c1_i32 dim 0 : vector<128x128xf32>, i32 -> vector<128x128xf32>
    %26 = vector.shape_cast %25 : vector<128x128xf32> to vector<8x16x128xf32>
    %c127_i32 = arith.constant 127 : i32
    %27 = tpu.dynamic_rotate %24 by %c127_i32 dim 0 : vector<128x128xf32>, i32 -> vector<128x128xf32>
    %28 = vector.shape_cast %27 : vector<128x128xf32> to vector<8x16x128xf32>
    %cst_10 = arith.constant 0.000000e+00 : f32
    %29 = vector.shape_cast %2 : vector<8x16x1xi1> to vector<8x16x1xi1>
    %30 = vector.broadcast %29 : vector<8x16x1xi1> to vector<8x16x128xi1>
    %31 = vector.broadcast %cst_10 : f32 to vector<8x16x128xf32>
    %32 = arith.select %30, %31, %26 : vector<8x16x128xi1>, vector<8x16x128xf32>
    %cst_11 = arith.constant 0.000000e+00 : f32
    %33 = vector.shape_cast %4 : vector<8x16x1xi1> to vector<8x16x1xi1>
    %34 = vector.broadcast %33 : vector<8x16x1xi1> to vector<8x16x128xi1>
    %35 = vector.broadcast %cst_11 : f32 to vector<8x16x128xf32>
    %36 = arith.select %34, %35, %28 : vector<8x16x128xi1>, vector<8x16x128xf32>
    %37 = arith.truncf %32 : vector<8x16x128xf32> to vector<8x16x128xbf16>
    %38 = arith.truncf %23 : vector<8x16x128xf32> to vector<8x16x128xbf16>
    %39 = arith.truncf %36 : vector<8x16x128xf32> to vector<8x16x128xbf16>
    %40 = tpu.concatenate %37, %38, %39 in 2 : vector<8x16x128xbf16>, vector<8x16x128xbf16>, vector<8x16x128xbf16> -> vector<8x16x384xbf16>
    %41 = vector.shape_cast %40 : vector<8x16x384xbf16> to vector<128x384xbf16>
    %c0_12 = arith.constant 0 : index
    %c0_13 = arith.constant 0 : index
    %42 = vector.load %arg4[%c0_12, %c0_13] : memref<384x128xbf16, #tpu.memory_space<vmem>>, vector<384x128xbf16>
    %cst_14 = arith.constant dense<0.000000e+00> : vector<128x128xf32>
    %43 = tpu.matmul %41, %42, %cst_14 {dimension_numbers = #tpu.dot_dimension_numbers<[1], [0], [0], [1], [0, 0, 1, 1], [], []>} : vector<128x384xbf16>, vector<384x128xbf16>, vector<128x128xf32> -> vector<128x128xf32>
    %44 = vector.shape_cast %43 : vector<128x128xf32> to vector<8x16x128xf32>
    %45 = vector.broadcast %11 : vector<1x1x128xf32> to vector<8x16x128xf32>
    %46 = arith.mulf %44, %45 : vector<8x16x128xf32>
    %47 = vector.broadcast %13 : vector<1x1x128xf32> to vector<8x16x128xf32>
    %48 = arith.addf %46, %47 : vector<8x16x128xf32>
    %49 = arith.negf %48 : vector<8x16x128xf32>
    %50 = math.exp %49 : vector<8x16x128xf32>
    %cst_15 = arith.constant 1.000000e+00 : f32
    %51 = vector.broadcast %cst_15 : f32 to vector<8x16x128xf32>
    %52 = arith.addf %51, %50 : vector<8x16x128xf32>
    %53 = arith.divf %51, %52 : vector<8x16x128xf32>
    %54 = arith.mulf %48, %53 : vector<8x16x128xf32>
    %55 = vector.shape_cast %54 : vector<8x16x128xf32> to vector<128x128xf32>
    %c1_i32_16 = arith.constant 1 : i32
    %56 = tpu.dynamic_rotate %55 by %c1_i32_16 dim 0 : vector<128x128xf32>, i32 -> vector<128x128xf32>
    %57 = vector.shape_cast %56 : vector<128x128xf32> to vector<8x16x128xf32>
    %c127_i32_17 = arith.constant 127 : i32
    %58 = tpu.dynamic_rotate %55 by %c127_i32_17 dim 0 : vector<128x128xf32>, i32 -> vector<128x128xf32>
    %59 = vector.shape_cast %58 : vector<128x128xf32> to vector<8x16x128xf32>
    %cst_18 = arith.constant 0.000000e+00 : f32
    %60 = vector.shape_cast %2 : vector<8x16x1xi1> to vector<8x16x1xi1>
    %61 = vector.broadcast %60 : vector<8x16x1xi1> to vector<8x16x128xi1>
    %62 = vector.broadcast %cst_18 : f32 to vector<8x16x128xf32>
    %63 = arith.select %61, %62, %57 : vector<8x16x128xi1>, vector<8x16x128xf32>
    %cst_19 = arith.constant 0.000000e+00 : f32
    %64 = vector.shape_cast %4 : vector<8x16x1xi1> to vector<8x16x1xi1>
    %65 = vector.broadcast %64 : vector<8x16x1xi1> to vector<8x16x128xi1>
    %66 = vector.broadcast %cst_19 : f32 to vector<8x16x128xf32>
    %67 = arith.select %65, %66, %59 : vector<8x16x128xi1>, vector<8x16x128xf32>
    %68 = arith.truncf %63 : vector<8x16x128xf32> to vector<8x16x128xbf16>
    %69 = arith.truncf %54 : vector<8x16x128xf32> to vector<8x16x128xbf16>
    %70 = arith.truncf %67 : vector<8x16x128xf32> to vector<8x16x128xbf16>
    %71 = tpu.concatenate %68, %69, %70 in 2 : vector<8x16x128xbf16>, vector<8x16x128xbf16>, vector<8x16x128xbf16> -> vector<8x16x384xbf16>
    %72 = vector.shape_cast %71 : vector<8x16x384xbf16> to vector<128x384xbf16>
    %c0_20 = arith.constant 0 : index
    %c0_21 = arith.constant 0 : index
    %73 = vector.load %arg7[%c0_20, %c0_21] : memref<384x128xbf16, #tpu.memory_space<vmem>>, vector<384x128xbf16>
    %cst_22 = arith.constant dense<0.000000e+00> : vector<128x128xf32>
    %74 = tpu.matmul %72, %73, %cst_22 {dimension_numbers = #tpu.dot_dimension_numbers<[1], [0], [0], [1], [0, 0, 1, 1], [], []>} : vector<128x384xbf16>, vector<384x128xbf16>, vector<128x128xf32> -> vector<128x128xf32>
    %75 = vector.shape_cast %74 : vector<128x128xf32> to vector<8x16x128xf32>
    %76 = arith.addf %75, %5 : vector<8x16x128xf32>
    %c0_23 = arith.constant 0 : index
    %c0_24 = arith.constant 0 : index
    %c0_25 = arith.constant 0 : index
    %77 = vector.load %arg8[%c0_23, %c0_24, %c0_25] : memref<8x16x128xf32, #tpu.memory_space<vmem>>, vector<8x16x128xf32>
    tpu.vector_store %arg8[%c0_23, %c0_24, %c0_25], %76 {strides = array<i32>} : memref<8x16x128xf32, #tpu.memory_space<vmem>>, vector<8x16x128xf32>,
    return
  }
  func.func @transform_0(%arg0: i32) -> (i32, i32, i32) {
    %c0_i32 = arith.constant 0 : i32
    %c0_i32_0 = arith.constant 0 : i32
    %c0_i32_1 = arith.constant 0 : i32
    return %arg0, %c0_i32, %c0_i32_0 : i32, i32, i32
  }
  func.func @transform_1(%arg0: i32) -> (i32, i32) {
    %c0_i32 = arith.constant 0 : i32
    %c0_i32_0 = arith.constant 0 : i32
    %c0_i32_1 = arith.constant 0 : i32
    return %c0_i32, %c0_i32_0 : i32, i32
  }
  func.func @transform_2(%arg0: i32) -> (i32, i32) {
    %c0_i32 = arith.constant 0 : i32
    %c0_i32_0 = arith.constant 0 : i32
    %c0_i32_1 = arith.constant 0 : i32
    return %c0_i32, %c0_i32_0 : i32, i32
  }
  func.func @transform_3(%arg0: i32) -> (i32, i32) {
    %c0_i32 = arith.constant 0 : i32
    %c0_i32_0 = arith.constant 0 : i32
    %c0_i32_1 = arith.constant 0 : i32
    return %c0_i32, %c0_i32_0 : i32, i32
  }
  func.func @transform_4(%arg0: i32) -> (i32, i32) {
    %c0_i32 = arith.constant 0 : i32
    %c0_i32_0 = arith.constant 0 : i32
    %c0_i32_1 = arith.constant 0 : i32
    return %c0_i32, %c0_i32_0 : i32, i32
  }
  func.func @transform_5(%arg0: i32) -> (i32, i32) {
    %c0_i32 = arith.constant 0 : i32
    %c0_i32_0 = arith.constant 0 : i32
    %c0_i32_1 = arith.constant 0 : i32
    return %c0_i32, %c0_i32_0 : i32, i32
  }
  func.func @transform_6(%arg0: i32) -> (i32, i32) {
    %c0_i32 = arith.constant 0 : i32
    %c0_i32_0 = arith.constant 0 : i32
    %c0_i32_1 = arith.constant 0 : i32
    return %c0_i32, %c0_i32_0 : i32, i32
  }
  func.func @transform_7(%arg0: i32) -> (i32, i32, i32) {
    %c0_i32 = arith.constant 0 : i32
    %c0_i32_0 = arith.constant 0 : i32
    %c0_i32_1 = arith.constant 0 : i32
    return %arg0, %c0_i32, %c0_i32_0 : i32, i32, i32
  }
}

</mosaic_0001>

<bundles_post_ra>
// kernel: resnet_block_apply.1
= control target key start
LH: loop header
LB: loop body
LE: loop exit
PB: predicated region body
PF: predicated region fallthrough
CT: control target
= control target key end

     0   :  { %s2442_s24 = smov 0   ;;  %s3268_s0 = inlined_call_operand.vmem [shape: f32[16,16,128], index: 0, kind: input, shape index: {}]   ;;  %s3269_s1 = inlined_call_operand.vmem [shape: f32[1,128], index: 1, kind: input, shape index: {}]   ;;  %s3270_s2 = inlined_call_operand.vmem [shape: f32[1,128], index: 2, kind: input, shape index: {}]   ;;  %s3271_s3 = inlined_call_operand.vmem [shape: bf16[384,128], index: 3, kind: input, shape index: {}]   ;;  %s3272_s4 = inlined_call_operand.vmem [shape: f32[1,128], index: 4, kind: input, shape index: {}]   ;;  %s3273_s5 = inlined_call_operand.vmem [shape: f32[1,128], index: 5, kind: input, shape index: {}]   ;;  %s3274_s6 = inlined_call_operand.vmem [shape: bf16[384,128], index: 6, kind: input, shape index: {}]   ;;  %s3275_s7 = inlined_call_operand.vmem [shape: f32[16,16,128], index: 7, kind: output, shape index: {}]  }
   0x1 LB: > { %s1739_s25 = sadd.s32 4294967295, %s2399_s24   ;;  %p1743_p0 = scmp.ge.s32.totalorder %s2399_s24, 1  ;;  %s2399_s24 = sphi %s2442_s24, %s17_s24  }
   0x2   : > { %p239_p1 = scmp.lt.s32.totalorder %s2399_s24, 3 }
   0x4   : > { %p240_p2 = pnand %p1743_p0, %p239_p1 }
   0x5   : > { %v2201_v0 = vld [vmem:[%s3271_s3 + $0x40] sm:$0xff] (!%p240_p2)   ;;  %v2204_v3 = vld [vmem:[%s3271_s3 + $0x48] sm:$0xff] (!%p240_p2)   ;;  %v2207_v6 = vld [vmem:[%s3271_s3 + $0x50] sm:$0xff] (!%p240_p2)   ;;  %s1744_s19 = sshll.u32 (!%p240_p2), %s1739_s25, 3  ;;  %vm2401_vm4 = vmmov (!%p240_p2), 1  }
   0x6   : > { %243 = sbr.rel (%p240_p2) target bundleno = 646 (0x286), region = 48  ;;  %v2202_v1 = vld [vmem:[%s3271_s3] sm:$0xff] (!%p240_p2)   ;;  %1968 = vmatprep.subr.bf16.mxu0 (!%p240_p2), %v2201_v0  ;;  %v2205_v4 = vld [vmem:[%s3271_s3 + $0x8] sm:$0xff] (!%p240_p2)   ;;  %v2208_v7 = vld [vmem:[%s3271_s3 + $0x10] sm:$0xff] (!%p240_p2)   ;;  %p274_p3 = scmp.lt.s32.totalorder (!%p240_p2), %s1744_s19, 15 }
   0x7   : > { %v2203_v2 = vld [vmem:[%s3271_s3 + $0x80] sm:$0xff] (!%p240_p2)   ;;  %1969 = vmatpush3.bf16.msra.mxu0 (!%p240_p2), %v2202_v1  ;;  %v2206_v5 = vld [vmem:[%s3271_s3 + $0x88] sm:$0xff] (!%p240_p2)   ;;  %v2209_v8 = vld [vmem:[%s3271_s3 + $0x90] sm:$0xff] (!%p240_p2)  }
   0x8   : > { %2128 = vmatprep.subr.bf16.mxu1 (!%p240_p2), %v2203_v2  ;;  %1970 = vmatprep.subr.bf16.mxu0 (!%p240_p2), %v2204_v3  ;;  %v2210_v9 = vld [vmem:[%s3271_s3 + $0x58] sm:$0xff] (!%p240_p2)   ;;  %v2213_v12 = vld [vmem:[%s3271_s3 + $0x60] sm:$0xff] (!%p240_p2)   ;;  %v2216_v15 = vld [vmem:[%s3271_s3 + $0x68] sm:$0xff] (!%p240_p2)  }
   0x9   : > { %2129 = vmatpush3.bf16.msra.mxu1 (!%p240_p2), %v2203_v2  ;;  %v2211_v10 = vld [vmem:[%s3271_s3 + $0x18] sm:$0xff] (!%p240_p2)   ;;  %v2215_v13 = vld [vmem:[%s3271_s3 + $0xa0] sm:$0xff] (!%p240_p2)   ;;  %v2218_v16 = vld [vmem:[%s3271_s3 + $0xa8] sm:$0xff] (!%p240_p2)  }
   0xa   : > { %2130 = vmatprep.subr.bf16.mxu1 (!%p240_p2), %v2206_v5  ;;  %v2212_v11 = vld [vmem:[%s3271_s3 + $0x98] sm:$0xff] (!%p240_p2)   ;;  %v2214_v14 = vld [vmem:[%s3271_s3 + $0x20] sm:$0xff] (!%p240_p2)   ;;  %v2217_v17 = vld [vmem:[%s3271_s3 + $0x28] sm:$0xff] (!%p240_p2)  }
   0xb   : > { %1971 = vmatpush3.bf16.msra.mxu0 (!%p240_p2), %v2205_v4  ;;  %v2219_v18 = vld [vmem:[%s3271_s3 + $0x70] sm:$0xff] (!%p240_p2)   ;;  %v2222_v21 = vld [vmem:[%s3271_s3 + $0x78] sm:$0xff] (!%p240_p2)   ;;  %v2531_v24 = vld [vmem:[%s3269_s1] ss:$0 sm:$0xff] (!%p240_p2) }
   0xc   : > { %1972 = vmatprep.subr.bf16.mxu0 (!%p240_p2), %v2207_v6  ;;  %v2220_v19 = vld [vmem:[%s3271_s3 + $0x30] sm:$0xff] (!%p240_p2)   ;;  %v2223_v25 = vld [vmem:[%s3271_s3 + $0x38] sm:$0xff] (!%p240_p2)   ;;  %v2539_v26 = vld [vmem:[%s3270_s2] ss:$0 sm:$0xff] (!%p240_p2) }
   0xd   : > { %2131 = vmatpush3.bf16.msra.mxu1 %v2206_v5  ;;  %s3281_s19 = smov (!%p274_p3, %s1744_s19), 15  ;;  %v2221_v20 = vld [vmem:[%s3271_s3 + $0xb0] sm:$0xff]   ;;  %v2224_v30 = vld [vmem:[%s3271_s3 + $0xb8] sm:$0xff]  }
   0xe   : > { %2132 = vmatprep.subr.bf16.mxu1 %v2209_v8  ;;  %s1964_s16 = sshll.u32 %s3281_s19, 4 }
   0xf   : > { %1973 = vmatpush3.bf16.msra.mxu0 %v2208_v7  ;;  %s2518_s28 = scalar_lea.vmem %s3268_s0, %s1964_s16  ;;  %s3223_s14 = scalar_lea.vmem %s3275_s7, %s1964_s16 }
  0x10   : > { %1974 = vmatprep.subr.bf16.mxu0 %v2210_v9  ;;  %v295_v22 = vld [vmem:[%s2518_s28] sm:$0xff]  ;;  %v296_v23 = vld [vmem:[%s2518_s28 + $0x8] sm:$0xff]  ;;  %v310_v29 = vld [vmem:[%s2518_s28 + $0x78] sm:$0xff] }
  0x11   : > { %2133 = vmatpush3.bf16.msra.mxu1 %v2209_v8  ;;  %v321_v27 = vmul.f32 %v2531_v24, %v295_v22  ;;  %v322_v28 = vmul.f32 %v2531_v24, %v296_v23  ;;  %v336_v31 = vmul.f32 %v2531_v24, %v310_v29  ;;  %v297_v32 = vld [vmem:[%s2518_s28 + $0x10] sm:$0xff]  ;;  %v298_v33 = vld [vmem:[%s2518_s28 + $0x18] sm:$0xff]  ;;  %v299_v37 = vld [vmem:[%s2518_s28 + $0x20] sm:$0xff] }
  0x12   : > { %2134 = vmatprep.subr.bf16.mxu1 %v2212_v11  ;;  %v323_v36 = vmul.f32 %v2531_v24, %v297_v32  ;;  %v324_v38 = vmul.f32 %v2531_v24, %v298_v33  ;;  %v300_v39 = vld [vmem:[%s2518_s28 + $0x28] sm:$0xff]  ;;  %v301_v40 = vld [vmem:[%s2518_s28 + $0x30] sm:$0xff]  ;;  %v325_v42 = vmul.f32 %v2531_v24, %v299_v37  ;;  %v302_v45 = vld [vmem:[%s2518_s28 + $0x38] sm:$0xff] }
  0x13   : > { %1975 = vmatpush3.bf16.msra.mxu0 %v2211_v10  ;;  %v2551_v34 = vadd.f32 %v2539_v26, %v321_v27  ;;  %v2554_v35 = vadd.f32 %v2539_v26, %v322_v28  ;;  %v2562_v41 = vadd.f32 %v2539_v26, %v336_v31  ;;  %v326_v43 = vmul.f32 %v2531_v24, %v300_v39  ;;  %v303_v50 = vld [vmem:[%s2518_s28 + $0x40] sm:$0xff]  ;;  %v304_v55 = vld [vmem:[%s2518_s28 + $0x48] sm:$0xff]  ;;  %v305_v56 = vld [vmem:[%s2518_s28 + $0x50] sm:$0xff] }
  0x14   : > { %1976 = vmatprep.subr.bf16.mxu0 %v2213_v12  ;;  %v327_v44 = vmul.f32 %v2531_v24, %v301_v40  ;;  %v2571_v48 = vadd.f32 %v2539_v26, %v323_v36  ;;  %v2574_v49 = vadd.f32 %v2539_v26, %v324_v38  ;;  %v2579_v52 = vadd.f32 %v2539_v26, %v325_v42  ;;  %v306_v57 = vld [vmem:[%s2518_s28 + $0x58] sm:$0xff]  ;;  %v307_v22 = vld [vmem:[%s2518_s28 + $0x60] sm:$0xff]  ;;  %v308_v37 = vld [vmem:[%s2518_s28 + $0x68] sm:$0xff] }
  0x15   : > { %2135 = vmatpush3.bf16.msra.mxu1 %v2212_v11  ;;  %v1752_v46 = vmul.f32 -1.442695, %v2551_v34  ;;  %v1753_v47 = vmul.f32 -1.442695, %v2554_v35  ;;  %v1767_v51 = vmul.f32 -1.442695, %v2562_v41  ;;  %v2582_v53 = vadd.f32 %v2539_v26, %v326_v43 }
  0x16   : > { %2136 = vmatprep.subr.bf16.mxu1 %v2215_v13  ;;  %v2585_v54 = vadd.f32 %v2539_v26, %v327_v44  ;;  %v1754_v58 = vmul.f32 -1.442695, %v2571_v48  ;;  %v1755_v59 = vmul.f32 -1.442695, %v2574_v49  ;;  %v328_v60 = vmul.f32 %v2531_v24, %v302_v45 }
  0x17   : > { %1977 = vmatpush3.bf16.msra.mxu0 %v2214_v14  ;;  %2249 = vpow2.f32 %v1752_v46  ;;  %v1756_v61 = vmul.f32 -1.442695, %v2579_v52  ;;  %v1757_v62 = vmul.f32 -1.442695, %v2582_v53  ;;  %v329_v0 = vmul.f32 %v2531_v24, %v303_v50 }
  0x18   : > { %1978 = vmatprep.subr.bf16.mxu0 %v2216_v15  ;;  %2251 = vpow2.f32 %v1753_v47  ;;  %v1758_v63 = vmul.f32 -1.442695, %v2585_v54  ;;  %v2598_v1 = vadd.f32 %v2539_v26, %v328_v60  ;;  %v330_v2 = vmul.f32 %v2531_v24, %v304_v55 }
  0x19   : > { %2137 = vmatpush3.bf16.msra.mxu1 %v2215_v13  ;;  %2253 = vpow2.f32 %v1767_v51  ;;  %v331_v3 = vmul.f32 %v2531_v24, %v305_v56  ;;  %v332_v4 = vmul.f32 %v2531_v24, %v306_v57  ;;  %v2604_v5 = vadd.f32 %v2539_v26, %v329_v0  ;;  %v309_v57 = vld [vmem:[%s2518_s28 + $0x70] sm:$0xff] }
  0x1a   : > { %2138 = vmatprep.subr.bf16.mxu1 %v2218_v16  ;;  %2255 = vpow2.f32 %v1754_v58  ;;  %v1759_v6 = vmul.f32 -1.442695, %v2598_v1  ;;  %v2608_v7 = vadd.f32 %v2539_v26, %v330_v2  ;;  %v333_v32 = vmul.f32 %v2531_v24, %v307_v22 }
  0x1b   : > { %1979 = vmatpush3.bf16.msra.mxu0 %v2217_v17  ;;  %2257 = vpow2.f32 %v1755_v59  ;;  %v2611_v8 = vadd.f32 %v2539_v26, %v331_v3  ;;  %v2614_v9 = vadd.f32 %v2539_v26, %v332_v4  ;;  %v1760_v10 = vmul.f32 -1.442695, %v2604_v5 }
  0x1c   : > { %1980 = vmatprep.subr.bf16.mxu0 %v2219_v18  ;;  %2259 = vpow2.f32 %v1756_v61  ;;  %v1761_v11 = vmul.f32 -1.442695, %v2608_v7  ;;  %v288_v17 = vlaneseq  ;;  %v2627_v45 = vadd.f32 %v2539_v26, %v333_v32 }
  0x1d   : > { %2139 = vmatpush3.bf16.msra.mxu1 %v2218_v16  ;;  %2261 = vpow2.f32 %v1757_v62  ;;  %v1762_v12 = vmul.f32 -1.442695, %v2611_v8  ;;  %v1763_v13 = vmul.f32 -1.442695, %v2614_v9  ;;  %v334_v46 = vmul.f32 %v2531_v24, %v308_v37 }
  0x1e   : > { %2140 = vmatprep.subr.bf16.mxu1 %v2221_v20  ;;  %2263 = vpow2.f32 %v1758_v63  ;;  %v2621_v28 = vshrl.u32 %v288_v17, 7  ;;  %v1764_v61 = vmul.f32 -1.442695, %v2627_v45  ;;  %v335_v2 = vmul.f32 %v2531_v24, %v309_v57 }
  0x1f   : > { %1981 = vmatpush3.bf16.msra.mxu0 %v2220_v19  ;;  %2265 = vpow2.f32 %v1759_v6  ;;  %v2639_v62 = vadd.f32 %v2539_v26, %v334_v46 }
  0x20   : > { %1982 = vmatprep.subr.bf16.mxu0 %v2222_v21  ;;  %2267 = vpow2.f32 %v1760_v10  ;;  %vm487_vm0 = vcmp.lt.s32.totalorder %v2621_v28, 1  ;;  %v290_v50 = vadd.s32 8, %v2621_v28  ;;  %vm520_vm1 = vcmp.lt.s32.totalorder %v2621_v28, 7 }
  0x21   : > { %2141 = vmatpush3.bf16.msra.mxu1 %v2221_v20  ;;  %v2250_v14 = vpop.eup %2249  ;;  %2269 = vpow2.f32 %v1761_v11  ;;  %vm1966_vm2 = vcmp.ne.s32.totalorder %v2621_v28, 0 }
  0x22   : > { %2142 = vmatprep.subr.bf16.mxu1 %v2224_v30  ;;  %v2252_v15 = vpop.eup %2251  ;;  %v407_v16 = vadd.f32 1.0, %v2250_v14  ;;  %2271 = vpow2.f32 %v1762_v12  ;;  %vm1967_vm3 = vcmp.ne.s32.totalorder %v290_v50, 15  ;;  %vm2668_vm5 = vmpackc.low %vm2401_vm4, %vm1966_vm2 }
  0x23   : > { %1983 = vmatpush3.bf16.msra.mxu0 %v2223_v25  ;;  %v2254_v18 = vpop.eup %2253  ;;  %v408_v19 = vadd.f32 1.0, %v2252_v15  ;;  %2273 = vpow2.f32 %v1763_v13  ;;  %vm2677_vm6 = vmpackc.low %vm1967_vm3, %vm2401_vm4 }
  0x24   : > { %v2256_v20 = vpop.eup %2255  ;;  %2275 = vrcp.f32 %v407_v16  ;;  %v422_v21 = vadd.f32 1.0, %v2254_v18 }
  0x25   : > { %2143 = vmatpush3.bf16.msra.mxu1 %v2224_v30  ;;  %v2258_v23 = vpop.eup %2257  ;;  %2277 = vrcp.f32 %v408_v19  ;;  %v409_v25 = vadd.f32 1.0, %v2256_v20 }
  0x26   : > { %v2260_v27 = vpop.eup %2259  ;;  %2279 = vrcp.f32 %v422_v21  ;;  %v410_v29 = vadd.f32 1.0, %v2258_v23 }
  0x27   : > { %v2262_v30 = vpop.eup %2261  ;;  %2281 = vrcp.f32 %v409_v25  ;;  %v411_v31 = vadd.f32 1.0, %v2260_v27 }
  0x28   : > { %v2264_v33 = vpop.eup %2263  ;;  %2283 = vrcp.f32 %v410_v29  ;;  %v412_v36 = vadd.f32 1.0, %v2262_v30 }
  0x29   : > { %v2266_v38 = vpop.eup %2265  ;;  %2285 = vrcp.f32 %v411_v31  ;;  %v413_v39 = vadd.f32 1.0, %v2264_v33 }
  0x2a   : > { %v2268_v40 = vpop.eup %2267  ;;  %2287 = vrcp.f32 %v412_v36  ;;  %v414_v42 = vadd.f32 1.0, %v2266_v38 }
  0x2b   : > { %v2270_v43 = vpop.eup %2269  ;;  %2289 = vrcp.f32 %v413_v39  ;;  %v415_v44 = vadd.f32 1.0, %v2268_v40 }
  0x2c   : > { %v2272_v47 = vpop.eup %2271  ;;  %v416_v51 = vadd.f32 1.0, %v2270_v43  ;;  %2291 = vrcp.f32 %v414_v42 }
  0x2d   : > { %v2274_v55 = vpop.eup %2273  ;;  %v417_v56 = vadd.f32 1.0, %v2272_v47  ;;  %2293 = vrcp.f32 %v415_v44 }
  0x2e   : > { %v2276_v58 = vpop.eup %2275  ;;  %2295 = vrcp.f32 %v416_v51  ;;  %v418_v38 = vadd.f32 1.0, %v2274_v55  ;;  %v2703_v55 = vadd.f32 %v2539_v26, %v335_v2 }
  0x2f   : > { %v2278_v59 = vpop.eup %2277  ;;  %v2635_v60 = vmul.f32 %v2276_v58, %v2551_v34  ;;  %2297 = vrcp.f32 %v417_v56 }
  0x30   : > { %v2280_v63 = vpop.eup %2279  ;;  %v456_v0 = vmul.f32 %v2278_v59, %v2554_v35  ;;  %2299 = vpow2.f32 %v1764_v61 }
  0x31   : > { %v2282_v3 = vpop.eup %2281  ;;  %v471_v4 = vrot.slane %v2635_v60, 7  ;;  %v2645_v6 = vmul.f32 %v2280_v63, %v2562_v41  ;;  %v504_v34 = vrot.slane %v2635_v60, 1  ;;  %v1765_v41 = vmul.f32 -1.442695, %v2639_v62 }
  0x32   : > { %v2284_v10 = vpop.eup %2283  ;;  %v472_v11 = vrot.slane %v456_v0, 7  ;;  %v585_v12 = vpack.c.bf16 %v456_v0, %v2635_v60  ;;  %v457_v13 = vmul.f32 %v2282_v3, %v2571_v48  ;;  %v505_v14 = vrot.slane %v456_v0, 1 }
  0x33   : > { %v2286_v35 = vpop.eup %2285  ;;  %v486_v15 = vrot.slane %v2645_v6, 7  ;;  %v2652_v24 = vmul.f32 %v2284_v10, %v2574_v49  ;;  %2301 = vpow2.f32 %v1765_v41 }
  0x34   : > { %v2288_v16 = vpop.eup %2287  ;;  %825 = vmatprep.mubr.bf16.mxu0 %v585_v12  ;;  %v502_v17 = vsel %vm487_vm0, %v471_v4, %v472_v11  ;;  %v506_v18 = vrot.slane %v457_v13, 1  ;;  %v535_v48 = vsel %vm520_vm1, %v504_v34, %v505_v14  ;;  %v459_v19 = vmul.f32 %v2286_v35, %v2579_v52 }
  0x35   : > { %v2290_v20 = vpop.eup %2289  ;;  %v503_v49 = vsel %vm487_vm0, %v486_v15, %v471_v4  ;;  %v507_v22 = vrot.slane %v2652_v24, 1  ;;  %v586_v23 = vpack.c.bf16 %v2652_v24, %v457_v13  ;;  %v473_v25 = vrot.slane %v457_v13, 7 }
  0x36   : > { %v1794_v27 = vpack.c.bf16 %v502_v17, %v503_v49  ;;  %v534_v52 = vsel %vm520_vm1, %v505_v14, %v506_v18  ;;  %v508_v30 = vrot.slane %v459_v19, 1  ;;  %v474_v31 = vrot.slane %v2652_v24, 7  ;;  %v2292_v32 = vpop.eup %2291 }
  0x37   : > { %v1826_v33 = vpack.c.bf16 %v534_v52, %v535_v48  ;;  %v533_v36 = vsel %vm520_vm1, %v506_v18, %v507_v22  ;;  %v2685_v37 = vmul.f32 %v2288_v16, %v2582_v53  ;;  %v2294_v39 = vpop.eup %2293  ;;  %v501_v43 = vsel %vm487_vm0, %v472_v11, %v473_v25 }
  0x38   : > { %1795 = vmatmul.mubr.msk.bf16.vlgmr.msra.gmra.mrb[0].mxu0 %vm2668_vm5, %v1794_v27  ;;  %v532_v40 = vsel %vm520_vm1, %v507_v22, %v508_v30  ;;  %v500_v42 = vsel %vm487_vm0, %v473_v25, %v474_v31  ;;  %v461_v44 = vmul.f32 %v2290_v20, %v2585_v54  ;;  %v2296_v46 = vpop.eup %2295  ;;  %v2700_v51 = vmul.f32 %v2292_v32, %v2598_v1 }
  0x39   : > { %2144 = vmatprep.mubr.msk.bf16.mxu1 %vm2677_vm6, %v1826_v33  ;;  %v1830_v53 = vpack.c.bf16 %v532_v40, %v533_v36  ;;  %833 = vmatprep.mubr.bf16.mxu0 %v586_v23  ;;  %v509_v47 = vrot.slane %v2685_v37, 1  ;;  %v2298_v56 = vpop.eup %2297  ;;  %v1798_v54 = vpack.c.bf16 %v500_v42, %v501_v43  ;;  %v475_v57 = vrot.slane %v459_v19, 7 }
  0x3a   : > { %v510_v50 = vrot.slane %v461_v44, 1  ;;  %v463_v58 = vmul.f32 %v2294_v39, %v2604_v5  ;;  %2303 = vrcp.f32 %v418_v38  ;;  %v511_v1 = vrot.slane %v2700_v51, 1  ;;  %v2300_v63 = vpop.eup %2299 }
  0x3b   : > { %2145 = vmatmul.mubr.msk.bf16.vlgmr.msra.gmra.mrb[0].mxu1 %vm2677_vm6, %v1830_v53  ;;  %v531_v61 = vsel %vm520_vm1, %v508_v30, %v509_v47  ;;  %v2714_v26 = vmul.f32 %v2296_v46, %v2608_v7  ;;  %v587_v0 = vpack.c.bf16 %v2685_v37, %v459_v19  ;;  %v476_v2 = vrot.slane %v2685_v37, 7 }
  0x3c   : > { %v530_v59 = vsel %vm520_vm1, %v509_v47, %v510_v50  ;;  %v512_v4 = vrot.slane %v463_v58, 1  ;;  %v529_v5 = vsel %vm520_vm1, %v510_v50, %v511_v1  ;;  %v465_v11 = vmul.f32 %v2298_v56, %v2611_v8 }
  0x3d   : > { %v1834_v3 = vpack.c.bf16 %v530_v59, %v531_v61  ;;  %v513_v12 = vrot.slane %v2714_v26, 1  ;;  %v1766_v13 = vmul.f32 -1.442695, %v2703_v55  ;;  %v498_v14 = vsel %vm487_vm0, %v475_v57, %v476_v2  ;;  %v2302_v16 = vpop.eup %2301 }
  0x3e   : > { %v528_v10 = vsel %vm520_vm1, %v511_v1, %v512_v4  ;;  %v499_v35 = vsel %vm487_vm0, %v474_v31, %v475_v57  ;;  %v514_v24 = vrot.slane %v465_v11, 1  ;;  %v419_v41 = vadd.f32 1.0, %v2300_v63 }
  0x3f   : > { %2148 = vmatprep.mubr.msk.bf16.mxu1 %vm2677_vm6, %v1834_v3  ;;  %v1838_v7 = vpack.c.bf16 %v528_v10, %v529_v5  ;;  %v527_v8 = vsel %vm520_vm1, %v512_v4, %v513_v12  ;;  %v1802_v18 = vpack.c.bf16 %v498_v14, %v499_v35  ;;  %v588_v20 = vpack.c.bf16 %v2700_v51, %v461_v44 }
  0x40   : > { %1799 = vmatmul.mubr.msk.bf16.gmra.mrb[4].mxu0 %vm2668_vm5, %v1798_v54  ;;  %v526_v17 = vsel %vm520_vm1, %v513_v12, %v514_v24  ;;  %2305 = vrcp.f32 %v419_v41  ;;  %v477_v49 = vrot.slane %v461_v44, 7  ;;  %v478_v22 = vrot.slane %v2700_v51, 7 }
  0x41   : > { %841 = vmatprep.mubr.bf16.mxu0 %v587_v0  ;;  %v1842_v48 = vpack.c.bf16 %v526_v17, %v527_v8  ;;  %2307 = vpow2.f32 %v1766_v13  ;;  %v420_v23 = vadd.f32 1.0, %v2302_v16  ;;  %v589_v33 = vpack.c.bf16 %v2714_v26, %v463_v58  ;;  %v2225_v8 = vld [vmem:[%s3274_s6 + $0x80] sm:$0xff]   ;;  %v2228_v16 = vld [vmem:[%s3274_s6 + $0x98] sm:$0xff]  }
  0x42   : > { %v496_v27 = vsel %vm487_vm0, %v477_v49, %v478_v22  ;;  %v497_v52 = vsel %vm487_vm0, %v476_v2, %v477_v49  ;;  %v479_v36 = vrot.slane %v463_v58, 7  ;;  %v480_v37 = vrot.slane %v2714_v26, 7  ;;  %2160 = vmatprep.subr.bf16.mxu0 %v2225_v8  ;;  %v2229_v17 = vld [vmem:[%s3274_s6 + $0xa0] sm:$0xff]  }
  0x43   : > { %2149 = vmatmul.mubr.msk.bf16.gmra.mrb[4].mxu1 %vm2677_vm6, %v1838_v7  ;;  %2309 = vrcp.f32 %v420_v23  ;;  %v1806_v30 = vpack.c.bf16 %v496_v27, %v497_v52  ;;  %v481_v51 = vrot.slane %v465_v11, 7  ;;  %v519_v61 = vrot.slane %v2645_v6, 1  ;;  %2161 = vmatpush3.bf16.msra.mxu0 %v2225_v8  ;;  %v2234_v49 = vld [vmem:[%s3274_s6] sm:$0xff]   ;;  %v2236_v23 = vld [vmem:[%s3274_s6 + $0x8] sm:$0xff]   ;;  %v2238_v27 = vld [vmem:[%s3274_s6 + $0x10] sm:$0xff]  }
  0x44   : > { %v2304_v19 = vpop.eup %2303  ;;  %2152 = vmatprep.mubr.msk.bf16.mxu1 %vm2677_vm6, %v1842_v48  ;;  %v494_v43 = vsel %vm487_vm0, %v479_v36, %v480_v37  ;;  %v495_v44 = vsel %vm487_vm0, %v478_v22, %v479_v36  ;;  %v2231_v48 = vld [vmem:[%s3274_s6 + $0xb0] sm:$0xff]   ;;  %v2235_v22 = vld [vmem:[%s3274_s6 + $0x48] sm:$0xff]   ;;  %v2239_v52 = vld [vmem:[%s3274_s6 + $0x58] sm:$0xff]  }
  0x45   : > { %v466_v25 = vmul.f32 %v2304_v19, %v2614_v9  ;;  %v1810_v47 = vpack.c.bf16 %v494_v43, %v495_v44  ;;  %v493_v58 = vsel %vm487_vm0, %v480_v37, %v481_v51  ;;  %v536_v5 = vsel %vm520_vm1, %v519_v61, %v504_v34  ;;  %v2232_v19 = vld [vmem:[%s3274_s6 + $0xb8] sm:$0xff]   ;;  %v2244_v36 = vld [vmem:[%s3274_s6 + $0x28] sm:$0xff]   ;;  %v2245_v37 = vld [vmem:[%s3274_s6 + $0x70] sm:$0xff]  }
  0x47   : > { %v515_v31 = vrot.slane %v466_v25, 1  ;;  %v590_v50 = vpack.c.bf16 %v466_v25, %v465_v11  ;;  %v482_v56 = vrot.slane %v466_v25, 7  ;;  %v2237_v25 = vld [vmem:[%s3274_s6 + $0x50] sm:$0xff]  }
  0x48   : > { %1803 = vmatmul.mubr.msk.bf16.gmra.mrb[8].mxu0 %vm2668_vm5, %v1802_v18  ;;  %v2230_v18 = vld [vmem:[%s3274_s6 + $0xa8] sm:$0xff]  }
  0x49   : > { %849 = vmatprep.mubr.bf16.mxu0 %v588_v20  ;;  %v525_v40 = vsel %vm520_vm1, %v514_v24, %v515_v31  ;;  %v492_v57 = vsel %vm487_vm0, %v481_v51, %v482_v56  ;;  %v2233_v20 = vld [vmem:[%s3274_s6 + $0x40] sm:$0xff]  }
  0x4a   : > { %v2306_v32 = vpop.eup %2305  ;;  %v1814_v26 = vpack.c.bf16 %v492_v57, %v493_v58  ;;  %2048 = vmatprep.subr.bf16.mxu1 %v2233_v20 }
  0x4b   : > { %v467_v38 = vmul.f32 %v2306_v32, %v2627_v45  ;;  %v2308_v39 = vpop.eup %2307  ;;  %2049 = vmatpush3.bf16.msra.mxu1 %v2234_v49  ;;  %v2242_v32 = vld [vmem:[%s3274_s6 + $0x20] sm:$0xff]  }
  0x4c   : > { %v421_v42 = vadd.f32 1.0, %v2308_v39  ;;  %2050 = vmatprep.subr.bf16.mxu1 %v2235_v22  ;;  %v2247_v39 = vld [vmem:[%s3274_s6 + $0x78] sm:$0xff]  }
  0x4d   : > { %v516_v9 = vrot.slane %v467_v38, 1  ;;  %v2310_v53 = vpop.eup %2309  ;;  %v483_v0 = vrot.slane %v467_v38, 7 }
  0x4e   : > { %2311 = vrcp.f32 %v421_v42  ;;  %v468_v54 = vmul.f32 %v2310_v53, %v2639_v62 }
  0x4f   : > { %v524_v46 = vsel %vm520_vm1, %v515_v31, %v516_v9  ;;  %v491_v11 = vsel %vm487_vm0, %v482_v56, %v483_v0  ;;  %2051 = vmatpush3.bf16.msra.mxu1 %v2236_v23  ;;  %v2241_v31 = vld [vmem:[%s3274_s6 + $0x60] sm:$0xff]  }
  0x50   : > { %1807 = vmatmul.mubr.msk.bf16.gmra.mrb[12].mxu0 %vm2668_vm5, %v1806_v30  ;;  %v1846_v45 = vpack.c.bf16 %v524_v46, %v525_v40  ;;  %v517_v59 = vrot.slane %v468_v54, 1  ;;  %v591_v63 = vpack.c.bf16 %v468_v54, %v467_v38  ;;  %v484_v2 = vrot.slane %v468_v54, 7  ;;  %2052 = vmatprep.subr.bf16.mxu1 %v2237_v25  ;;  %v2240_v30 = vld [vmem:[%s3274_s6 + $0x18] sm:$0xff]   ;;  %v2246_v38 = vld [vmem:[%s3274_s6 + $0x30] sm:$0xff]   ;;  %v2885_v54 = vld [vmem:[%s3273_s5] ss:$0 sm:$0xff] }
  0x51   : > { %857 = vmatprep.mubr.bf16.mxu0 %v589_v33  ;;  %v2243_v33 = vld [vmem:[%s3274_s6 + $0x68] sm:$0xff]  }
  0x52   : > { %2153 = vmatmul.mubr.msk.bf16.gmra.mrb[8].mxu1 %vm2677_vm6, %v1846_v45  ;;  %v523_v4 = vsel %vm520_vm1, %v516_v9, %v517_v59  ;;  %v490_v10 = vsel %vm487_vm0, %v483_v0, %v484_v2  ;;  %v2248_v9 = vld [vmem:[%s3274_s6 + $0x38] sm:$0xff]  }
  0x53   : > { %v1818_v13 = vpack.c.bf16 %v490_v10, %v491_v11  ;;  %2053 = vmatpush3.bf16.msra.mxu1 %v2238_v27 }
  0x54   : > { %2054 = vmatprep.subr.bf16.mxu1 %v2239_v52 }
  0x57   : > { %2055 = vmatpush3.bf16.msra.mxu1 %v2240_v30 }
  0x58   : > { %1811 = vmatmul.mubr.msk.bf16.gmra.mrb[16].mxu0 %vm2668_vm5, %v1810_v47  ;;  %v2312_v1 = vpop.eup %2311  ;;  %2056 = vmatprep.subr.bf16.mxu1 %v2241_v31  ;;  %v2880_v47 = vld [vmem:[%s3272_s4] ss:$0 sm:$0xff] }
  0x59   : > { %865 = vmatprep.mubr.bf16.mxu0 %v590_v50  ;;  %v469_v62 = vmul.f32 %v2312_v1, %v2703_v55 }
  0x5b   : > { %v518_v3 = vrot.slane %v469_v62, 1  ;;  %v592_v34 = vpack.c.bf16 %v2645_v6, %v469_v62  ;;  %v485_v14 = vrot.slane %v469_v62, 7  ;;  %v2226_v6 = vld [vmem:[%s3274_s6 + $0x88] sm:$0xff]   ;;  %2057 = vmatpush3.bf16.msra.mxu1 %v2242_v32 }
  0x5c   : > { %2162 = vmatprep.subr.bf16.mxu0 %v2226_v6  ;;  %2058 = vmatprep.subr.bf16.mxu1 %v2243_v33 }
  0x5d   : > { %v522_v55 = vsel %vm520_vm1, %v517_v59, %v518_v3  ;;  %v521_v7 = vsel %vm520_vm1, %v518_v3, %v519_v61  ;;  %v488_v35 = vsel %vm487_vm0, %v485_v14, %v486_v15  ;;  %v489_v24 = vsel %vm487_vm0, %v484_v2, %v485_v14  ;;  %2163 = vmatpush3.bf16.msra.mxu0 %v2226_v6  ;;  %v2227_v15 = vld [vmem:[%s3274_s6 + $0x90] sm:$0xff]  }
  0x5e   : > { %v1850_v60 = vpack.c.bf16 %v522_v55, %v523_v4  ;;  %v1854_v12 = vpack.c.bf16 %v536_v5, %v521_v7  ;;  %v1822_v41 = vpack.c.bf16 %v488_v35, %v489_v24  ;;  %2164 = vmatprep.subr.bf16.mxu0 %v2227_v15 }
  0x5f   : > { %2059 = vmatpush3.bf16.msra.mxu1 %v2244_v36 }
  0x60   : > { %1815 = vmatmul.mubr.msk.bf16.gmra.mrb[20].mxu0 %vm2668_vm5, %v1814_v26  ;;  %2156 = vmatprep.mubr.msk.bf16.mxu1 %vm2677_vm6, %v1850_v60 }
  0x61   : > { %873 = vmatprep.mubr.bf16.mxu0 %v591_v63  ;;  %2157 = vmatmul.mubr.msk.bf16.gmra.mrb[12].mxu1 %vm2677_vm6, %v1854_v12 }
  0x62   : > { %2165 = vmatpush3.bf16.msra.mxu0 %v2227_v15  ;;  %2060 = vmatprep.subr.bf16.mxu1 %v2245_v37 }
  0x63   : > { %2166 = vmatprep.subr.bf16.mxu0 %v2228_v16  ;;  %2061 = vmatpush3.bf16.msra.mxu1 %v2246_v38 }
  0x64   : > { %2062 = vmatprep.subr.bf16.mxu1 %v2247_v39 }
  0x66   : > { %2167 = vmatpush3.bf16.msra.mxu0 %v2228_v16 }
  0x67   : > { %2168 = vmatprep.subr.bf16.mxu0 %v2229_v17  ;;  %2063 = vmatpush3.bf16.msra.mxu1 %v2248_v9 }
  0x68   : > { %1819 = vmatmul.mubr.msk.bf16.gmra.mrb[24].mxu0 %vm2668_vm5, %v1818_v13 }
  0x69   : > { %881 = vmatprep.mubr.bf16.mxu0 %v592_v34 }
  0x6a   : > { %2169 = vmatpush3.bf16.msra.mxu0 %v2229_v17 }
  0x6b   : > { %2170 = vmatprep.subr.bf16.mxu0 %v2230_v18 }
  0x6e   : > { %2171 = vmatpush3.bf16.msra.mxu0 %v2230_v18 }
  0x6f   : > { %2172 = vmatprep.subr.bf16.mxu0 %v2231_v48 }
  0x70   : > { %1823 = vmatmul.mubr.msk.bf16.gmra.mrb[28].mxu0 %vm2668_vm5, %v1822_v41 }
  0x72   : > { %2173 = vmatpush3.bf16.msra.mxu0 %v2231_v48 }
  0x73   : > { %2174 = vmatprep.subr.bf16.mxu0 %v2232_v19 }
  0x76   : > { %2175 = vmatpush3.bf16.msra.mxu0 %v2232_v19 }
 0x10b   : > { %v1984_v40 = vpop.f32.mrb[0].mxu0 }
 0x10c   : > { %v1985_v42 = vpop.f32.mrb[1].mxu0 }
 0x10d   : > { %v1986_v43 = vadd.f32 %v1985_v42, %v1984_v40  ;;  %v1987_v44 = vpop.f32.mrb[2].mxu0 }
 0x10e   : > { %v2146_v46 = vpop.f32.mrb[0].mxu1  ;;  %v1988_v45 = vpop.f32.mrb[3].mxu0 }
 0x10f   : > { %v1989_v53 = vadd.f32 %v1988_v45, %v1987_v44  ;;  %v924_v50 = vpop.f32.mrb[1].mxu1 }
 0x110   : > { %v925_v51 = vadd.f32 %v1986_v43, %v924_v50  ;;  %v2147_v56 = vpop.f32.mrb[2].mxu1 }
 0x111   : > { %v927_v57 = vpop.f32.mrb[3].mxu1 }
 0x112   : > { %v993_v58 = vmul.f32 %v2880_v47, %v925_v51  ;;  %v928_v59 = vadd.f32 %v1989_v53, %v927_v57 }
 0x113   : > { %v1990_v61 = vpop.f32.mrb[4].mxu0 }
 0x114   : > { %v2889_v1 = vadd.f32 %v2885_v54, %v993_v58  ;;  %v994_v26 = vmul.f32 %v2880_v47, %v928_v59  ;;  %v1991_v63 = vpop.f32.mrb[5].mxu0 }
 0x115   : > { %v1992_v0 = vadd.f32 %v1991_v63, %v1990_v61  ;;  %v1993_v2 = vpop.f32.mrb[6].mxu0 }
 0x116   : > { %v1858_v62 = vmul.f32 -1.442695, %v2889_v1  ;;  %v2894_v3 = vadd.f32 %v2885_v54, %v994_v26  ;;  %v1994_v4 = vpop.f32.mrb[7].mxu0  ;;  %v2150_v5 = vpop.f32.mrb[4].mxu1 }
 0x117   : > { %v933_v10 = vadd.f32 %v2146_v46, %v1992_v0  ;;  %v1995_v11 = vadd.f32 %v1994_v4, %v1993_v2  ;;  %v940_v55 = vpop.f32.mrb[5].mxu1 }
 0x118   : > { %2313 = vpow2.f32 %v1858_v62  ;;  %v1859_v7 = vmul.f32 -1.442695, %v2894_v3  ;;  %v2151_v60 = vpop.f32.mrb[6].mxu1 }
 0x119   : > { %v995_v12 = vmul.f32 %v2880_v47, %v933_v10  ;;  %v936_v13 = vadd.f32 %v2147_v56, %v1995_v11  ;;  %v943_v34 = vpop.f32.mrb[7].mxu1 }
 0x11a   : > { %2315 = vpow2.f32 %v1859_v7 }
 0x11b   : > { %v2899_v14 = vadd.f32 %v2885_v54, %v995_v12  ;;  %v996_v35 = vmul.f32 %v2880_v47, %v936_v13  ;;  %v1996_v24 = vpop.f32.mrb[8].mxu0 }
 0x11c   : > { %v1997_v41 = vpop.f32.mrb[9].mxu0 }
 0x11d   : > { %v1860_v8 = vmul.f32 -1.442695, %v2899_v14  ;;  %v2904_v6 = vadd.f32 %v2885_v54, %v996_v35  ;;  %v1998_v15 = vadd.f32 %v1997_v41, %v1996_v24  ;;  %v1999_v16 = vpop.f32.mrb[10].mxu0 }
 0x11e   : > { %v2000_v17 = vpop.f32.mrb[11].mxu0 }
 0x11f   : > { %2317 = vpow2.f32 %v1860_v8  ;;  %v1861_v18 = vmul.f32 -1.442695, %v2904_v6  ;;  %v2001_v48 = vadd.f32 %v2000_v17, %v1999_v16  ;;  %v941_v19 = vadd.f32 %v1998_v15, %v940_v55 }
 0x121   : > { %2319 = vpow2.f32 %v1861_v18  ;;  %v997_v20 = vmul.f32 %v2880_v47, %v941_v19  ;;  %v944_v49 = vadd.f32 %v2001_v48, %v943_v34 }
 0x122   : > { %v2314_v22 = vpop.eup %2313 }
 0x123   : > { %v1079_v23 = vadd.f32 1.0, %v2314_v22  ;;  %v2909_v25 = vadd.f32 %v2885_v54, %v997_v20  ;;  %v998_v27 = vmul.f32 %v2880_v47, %v944_v49  ;;  %v2002_v52 = vpop.f32.mrb[12].mxu0 }
 0x124   : > { %v2316_v30 = vpop.eup %2315  ;;  %v2003_v31 = vpop.f32.mrb[13].mxu0 }
 0x125   : > { %2321 = vrcp.f32 %v1079_v23  ;;  %v1080_v32 = vadd.f32 1.0, %v2316_v30  ;;  %v1862_v33 = vmul.f32 -1.442695, %v2909_v25  ;;  %v2914_v36 = vadd.f32 %v2885_v54, %v998_v27  ;;  %v2005_v37 = vpop.f32.mrb[14].mxu0  ;;  %v2154_v43 = vpop.f32.mrb[8].mxu1 }
 0x126   : > { %v2004_v38 = vadd.f32 %v2003_v31, %v2002_v52  ;;  %v2006_v39 = vpop.f32.mrb[15].mxu0  ;;  %v956_v45 = vpop.f32.mrb[9].mxu1 }
 0x127   : > { %2323 = vrcp.f32 %v1080_v32  ;;  %v1863_v9 = vmul.f32 -1.442695, %v2914_v36  ;;  %v2007_v40 = vadd.f32 %v2006_v39, %v2005_v37  ;;  %v2918_v51 = vpop.f32.mrb[10].mxu1 }
 0x128   : > { %2325 = vpow2.f32 %v1862_v33  ;;  %v949_v42 = vadd.f32 %v2150_v5, %v2004_v38  ;;  %v959_v59 = vpop.f32.mrb[11].mxu1 }
 0x129   : > { %v2318_v44 = vpop.eup %2317  ;;  %2327 = vpow2.f32 %v1863_v9  ;;  %v952_v46 = vadd.f32 %v2151_v60, %v2007_v40 }
 0x12a   : > { %v1081_v53 = vadd.f32 1.0, %v2318_v44  ;;  %v999_v50 = vmul.f32 %v2880_v47, %v949_v42 }
 0x12b   : > { %v2320_v56 = vpop.eup %2319  ;;  %v1000_v57 = vmul.f32 %v2880_v47, %v952_v46  ;;  %v2008_v58 = vpop.f32.mrb[16].mxu0 }
 0x12c   : > { %2329 = vrcp.f32 %v1081_v53  ;;  %v1082_v61 = vadd.f32 1.0, %v2320_v56  ;;  %v2922_v26 = vadd.f32 %v2885_v54, %v999_v50  ;;  %v2009_v63 = vpop.f32.mrb[17].mxu0 }
 0x12d   : > { %v2925_v0 = vadd.f32 %v2885_v54, %v1000_v57  ;;  %v2010_v2 = vadd.f32 %v2009_v63, %v2008_v58  ;;  %v2011_v62 = vpop.f32.mrb[18].mxu0 }
 0x12e   : > { %2331 = vrcp.f32 %v1082_v61  ;;  %v1864_v4 = vmul.f32 -1.442695, %v2922_v26  ;;  %v2012_v5 = vpop.f32.mrb[19].mxu0 }
 0x12f   : > { %v2322_v10 = vpop.eup %2321  ;;  %v1865_v11 = vmul.f32 -1.442695, %v2925_v0  ;;  %v2013_v55 = vadd.f32 %v2012_v5, %v2011_v62  ;;  %v957_v7 = vadd.f32 %v2010_v2, %v956_v45 }
 0x130   : > { %v2930_v60 = vmul.f32 %v2322_v10, %v2889_v1  ;;  %2333 = vpow2.f32 %v1864_v4 }
 0x131   : > { %v2324_v12 = vpop.eup %2323  ;;  %2335 = vpow2.f32 %v1865_v11  ;;  %v1001_v13 = vmul.f32 %v2880_v47, %v957_v7  ;;  %v960_v34 = vadd.f32 %v2013_v55, %v959_v59 }
 0x132   : > { %v2326_v35 = vpop.eup %2325  ;;  %v1143_v24 = vrot.slane %v2930_v60, 7  ;;  %v2935_v41 = vmul.f32 %v2324_v12, %v2894_v3  ;;  %v1175_v15 = vrot.slane %v2930_v60, 1 }
 0x133   : > { %v2328_v8 = vpop.eup %2327  ;;  %v1083_v16 = vadd.f32 1.0, %v2326_v35  ;;  %v2939_v17 = vadd.f32 %v2885_v54, %v1001_v13  ;;  %v1002_v1 = vmul.f32 %v2880_v47, %v960_v34  ;;  %v2014_v18 = vpop.f32.mrb[20].mxu0 }
 0x134   : > { %v1144_v48 = vrot.slane %v2935_v41, 7  ;;  %v1176_v19 = vrot.slane %v2935_v41, 1  ;;  %v1084_v20 = vadd.f32 1.0, %v2328_v8  ;;  %v2015_v49 = vpop.f32.mrb[21].mxu0  ;;  %v1247_v3 = vpack.c.bf16 %v2935_v41, %v2930_v60  ;;  %v2964_v42 = vpop.f32.mrb[12].mxu1 }
 0x135   : > { %2337 = vrcp.f32 %v1083_v16  ;;  %v1866_v22 = vmul.f32 -1.442695, %v2939_v17  ;;  %v2948_v23 = vadd.f32 %v2885_v54, %v1002_v1  ;;  %v2016_v27 = vadd.f32 %v2015_v49, %v2014_v18  ;;  %v2017_v52 = vpop.f32.mrb[22].mxu0  ;;  %v972_v45 = vpop.f32.mrb[13].mxu1 }
 0x136   : > { %v2330_v30 = vpop.eup %2329  ;;  %v2954_v31 = vsel %vm487_vm0, %v1143_v24, %v1144_v48  ;;  %2339 = vrcp.f32 %v1084_v20  ;;  %1487 = vmatprep.mubr.bf16.mxu1 %v1247_v3  ;;  %v2018_v32 = vpop.f32.mrb[23].mxu0  ;;  %v1205_v33 = vsel %vm520_vm1, %v1175_v15, %v1176_v19 }
 0x137   : > { %v2961_v37 = vmul.f32 %v2330_v30, %v2899_v14  ;;  %2341 = vpow2.f32 %v1866_v22  ;;  %v1867_v38 = vmul.f32 -1.442695, %v2948_v23  ;;  %v965_v39 = vadd.f32 %v2154_v43, %v2016_v27  ;;  %v2972_v56 = vpop.f32.mrb[14].mxu1 }
 0x138   : > { %v2332_v9 = vpop.eup %2331  ;;  %v2019_v40 = vadd.f32 %v2018_v32, %v2017_v52  ;;  %v975_v2 = vpop.f32.mrb[15].mxu1 }
 0x139   : > { %v2967_v44 = vmul.f32 %v2332_v9, %v2904_v6  ;;  %2343 = vpow2.f32 %v1867_v38  ;;  %v1003_v46 = vmul.f32 %v2880_v47, %v965_v39  ;;  %v1177_v53 = vrot.slane %v2961_v37, 1 }
 0x13a   : > { %v2334_v50 = vpop.eup %2333  ;;  %v968_v14 = vadd.f32 %v2918_v51, %v2019_v40  ;;  %v1145_v43 = vrot.slane %v2961_v37, 7 }
 0x13b   : > { %v2336_v57 = vpop.eup %2335  ;;  %v1178_v58 = vrot.slane %v2967_v44, 1  ;;  %v1085_v59 = vadd.f32 1.0, %v2334_v50  ;;  %v2977_v6 = vadd.f32 %v2885_v54, %v1003_v46  ;;  %v2020_v61 = vpop.f32.mrb[24].mxu0  ;;  %v1204_v63 = vsel %vm520_vm1, %v1176_v19, %v1177_v53 }
 0x13c   : > { %v1086_v62 = vadd.f32 1.0, %v2336_v57  ;;  %v1004_v4 = vmul.f32 %v2880_v47, %v968_v14  ;;  %v2021_v51 = vpop.f32.mrb[25].mxu0  ;;  %v1932_v5 = vpack.c.bf16 %v1204_v63, %v1205_v33  ;;  %v1248_v10 = vpack.c.bf16 %v2967_v44, %v2961_v37 }
 0x13d   : > { %2345 = vrcp.f32 %v1085_v59  ;;  %v1868_v11 = vmul.f32 -1.442695, %v2977_v6  ;;  %v2022_v55 = vadd.f32 %v2021_v51, %v2020_v61  ;;  %v2023_v7 = vpop.f32.mrb[26].mxu0  ;;  %v1203_v12 = vsel %vm520_vm1, %v1177_v53, %v1178_v58 }
 0x13e   : > { %2347 = vrcp.f32 %v1086_v62  ;;  %v2988_v13 = vadd.f32 %v2885_v54, %v1004_v4  ;;  %v2024_v34 = vpop.f32.mrb[27].mxu0  ;;  %2176 = vmatprep.mubr.msk.bf16.mxu0 %vm2677_vm6, %v1932_v5  ;;  %v1146_v35 = vrot.slane %v2967_v44, 7  ;;  %v2995_v41 = vsel %vm487_vm0, %v1144_v48, %v1145_v43 }
 0x13f   : > { %v2338_v8 = vpop.eup %2337  ;;  %2349 = vpow2.f32 %v1868_v11  ;;  %v2025_v16 = vadd.f32 %v2024_v34, %v2023_v7  ;;  %v973_v1 = vadd.f32 %v2022_v55, %v972_v45 }
 0x140   : > { %v2340_v18 = vpop.eup %2339  ;;  %v2998_v19 = vmul.f32 %v2338_v8, %v2909_v25  ;;  %v1869_v20 = vmul.f32 -1.442695, %v2988_v13  ;;  %v3003_v49 = vsel %vm487_vm0, %v1145_v43, %v1146_v35 }
 0x141   : > { %v2342_v3 = vpop.eup %2341  ;;  %v3006_v22 = vmul.f32 %v2340_v18, %v2914_v36  ;;  %v1005_v48 = vmul.f32 %v2880_v47, %v973_v1  ;;  %v976_v27 = vadd.f32 %v2025_v16, %v975_v2  ;;  %v1904_v52 = vpack.c.bf16 %v3003_v49, %v2995_v41 }
 0x142   : > { %v1147_v30 = vrot.slane %v2998_v19, 7  ;;  %v1179_v25 = vrot.slane %v2998_v19, 1  ;;  %v1087_v32 = vadd.f32 1.0, %v2342_v3  ;;  %2351 = vpow2.f32 %v1869_v20 }
 0x143   : > { %v2344_v33 = vpop.eup %2343  ;;  %v1148_v38 = vrot.slane %v3006_v22, 7  ;;  %v1180_v39 = vrot.slane %v3006_v22, 1  ;;  %v3016_v36 = vadd.f32 %v2885_v54, %v1005_v48  ;;  %v1006_v9 = vmul.f32 %v2880_v47, %v976_v27  ;;  %v2026_v40 = vpop.f32.mrb[28].mxu0 }
 0x144   : > { %v1202_v46 = vsel %vm520_vm1, %v1178_v58, %v1179_v25  ;;  %2353 = vrcp.f32 %v1087_v32  ;;  %v1088_v45 = vadd.f32 1.0, %v2344_v33  ;;  %v2027_v53 = vpop.f32.mrb[29].mxu0  ;;  %v1249_v50 = vpack.c.bf16 %v3006_v22, %v2998_v19 }
 0x145   : > { %v1870_v14 = vmul.f32 -1.442695, %v3016_v36  ;;  %v3025_v43 = vadd.f32 %v2885_v54, %v1006_v9  ;;  %v2028_v57 = vadd.f32 %v2027_v53, %v2026_v40  ;;  %v2029_v59 = vpop.f32.mrb[30].mxu0  ;;  %v1936_v61 = vpack.c.bf16 %v1202_v46, %v1203_v12 }
 0x146   : > { %2355 = vrcp.f32 %v1088_v45  ;;  %v2030_v63 = vpop.f32.mrb[31].mxu0  ;;  %v1201_v2 = vsel %vm520_vm1, %v1179_v25, %v1180_v39  ;;  %v3031_v58 = vsel %vm487_vm0, %v1147_v30, %v1148_v38  ;;  %v3035_v62 = vsel %vm487_vm0, %v1146_v35, %v1147_v30 }
 0x147   : > { %v2346_v4 = vpop.eup %2345  ;;  %2357 = vpow2.f32 %v1870_v14  ;;  %v1871_v51 = vmul.f32 -1.442695, %v3025_v43  ;;  %v981_v5 = vadd.f32 %v2964_v42, %v2028_v57  ;;  %v2031_v11 = vadd.f32 %v2030_v63, %v2029_v59  ;;  %2177 = vmatmul.mubr.msk.bf16.vlgmr.msra.gmra.mrb[32].mxu0 %vm2677_vm6, %v1936_v61 }
 0x148   : > { %v2348_v55 = vpop.eup %2347  ;;  %v3042_v7 = vmul.f32 %v2346_v4, %v2922_v26  ;;  %v1908_v12 = vpack.c.bf16 %v3031_v58, %v3035_v62 }
 0x149   : > { %v2350_v34 = vpop.eup %2349  ;;  %v3047_v35 = vmul.f32 %v2348_v55, %v2925_v0  ;;  %2359 = vpow2.f32 %v1871_v51  ;;  %v1007_v8 = vmul.f32 %v2880_v47, %v981_v5  ;;  %v984_v42 = vadd.f32 %v2972_v56, %v2031_v11 }
 0x14a   : > { %v1089_v16 = vadd.f32 1.0, %v2350_v34  ;;  %v1181_v1 = vrot.slane %v3042_v7, 1  ;;  %v1149_v18 = vrot.slane %v3042_v7, 7 }
 0x14b   : > { %v3054_v26 = vadd.f32 %v2885_v54, %v1007_v8  ;;  %v1008_v20 = vmul.f32 %v2880_v47, %v984_v42  ;;  %v1182_v3 = vrot.slane %v3047_v35, 1  ;;  %v1250_v0 = vpack.c.bf16 %v3047_v35, %v3042_v7 }
 0x14c   : > { %v2352_v48 = vpop.eup %2351  ;;  %2361 = vrcp.f32 %v1089_v16  ;;  %v1200_v56 = vsel %vm520_vm1, %v1180_v39, %v1181_v1  ;;  %v1150_v27 = vrot.slane %v3047_v35, 7  ;;  %v3065_v30 = vsel %vm487_vm0, %v1148_v38, %v1149_v18 }
 0x14d   : > { %v1090_v25 = vadd.f32 1.0, %v2352_v48  ;;  %v1872_v32 = vmul.f32 -1.442695, %v3054_v26  ;;  %v3069_v47 = vadd.f32 %v2885_v54, %v1008_v20  ;;  %v1940_v33 = vpack.c.bf16 %v1200_v56, %v1201_v2 }
 0x14e   : > { %v2354_v9 = vpop.eup %2353  ;;  %v1199_v40 = vsel %vm520_vm1, %v1181_v1, %v1182_v3  ;;  %v3075_v39 = vsel %vm487_vm0, %v1149_v18, %v1150_v27 }
 0x14f   : > { %v3078_v46 = vmul.f32 %v2354_v9, %v2939_v17  ;;  %2363 = vrcp.f32 %v1090_v25  ;;  %v1873_v38 = vmul.f32 -1.442695, %v3069_v47  ;;  %2180 = vmatprep.mubr.msk.bf16.mxu0 %vm2677_vm6, %v1940_v33  ;;  %v1912_v54 = vpack.c.bf16 %v3075_v39, %v3065_v30  ;;  %v2377_v39 = vld [vmem:[%s2518_s28] sm:$0xff] }
 0x150   : > { %v2356_v45 = vpop.eup %2355  ;;  %2365 = vpow2.f32 %v1872_v32 }
 0x151   : > { %v2358_v53 = vpop.eup %2357  ;;  %v1151_v14 = vrot.slane %v3078_v46, 7  ;;  %v1183_v57 = vrot.slane %v3078_v46, 1  ;;  %v3088_v59 = vmul.f32 %v2356_v45, %v2948_v23  ;;  %2367 = vpow2.f32 %v1873_v38 }
 0x152   : > { %v1091_v17 = vadd.f32 1.0, %v2358_v53 }
 0x153   : > { %v2360_v61 = vpop.eup %2359  ;;  %v1152_v63 = vrot.slane %v3088_v59, 7  ;;  %v1184_v2 = vrot.slane %v3088_v59, 1  ;;  %v1198_v4 = vsel %vm520_vm1, %v1182_v3, %v1183_v57  ;;  %v1251_v51 = vpack.c.bf16 %v3088_v59, %v3078_v46  ;;  %v2378_v59 = vld [vmem:[%s2518_s28 + $0x8] sm:$0xff] }
 0x154   : > { %2369 = vrcp.f32 %v1091_v17  ;;  %v1092_v5 = vadd.f32 1.0, %v2360_v61  ;;  %v1944_v11 = vpack.c.bf16 %v1198_v4, %v1199_v40  ;;  %v3098_v23 = vsel %vm487_vm0, %v1150_v27, %v1151_v14 }
 0x155   : > { %v1197_v55 = vsel %vm520_vm1, %v1183_v57, %v1184_v2  ;;  %v3104_v34 = vsel %vm487_vm0, %v1151_v14, %v1152_v63 }
 0x156   : > { %v2362_v8 = vpop.eup %2361  ;;  %2371 = vrcp.f32 %v1092_v5  ;;  %2181 = vmatmul.mubr.msk.bf16.gmra.mrb[36].mxu0 %vm2677_vm6, %v1944_v11  ;;  %v1916_v42 = vpack.c.bf16 %v3104_v34, %v3098_v23 }
 0x157   : > { %v3111_v16 = vmul.f32 %v2362_v8, %v2977_v6 }
 0x159   : > { %v2364_v1 = vpop.eup %2363  ;;  %v1185_v18 = vrot.slane %v3111_v16, 1  ;;  %v1153_v20 = vrot.slane %v3111_v16, 7 }
 0x15a   : > { %v2366_v3 = vpop.eup %2365  ;;  %v1138_v48 = vmul.f32 %v2364_v1, %v2988_v13 }
 0x15b   : > { %v2368_v56 = vpop.eup %2367  ;;  %v1093_v27 = vadd.f32 1.0, %v2366_v3  ;;  %v1196_v25 = vsel %vm520_vm1, %v1184_v2, %v1185_v18  ;;  %v1164_v32 = vsel %vm487_vm0, %v1152_v63, %v1153_v20 }
 0x15c   : > { %v1094_v33 = vadd.f32 1.0, %v2368_v56  ;;  %v1948_v9 = vpack.c.bf16 %v1196_v25, %v1197_v55  ;;  %v1186_v6 = vrot.slane %v1138_v48, 1  ;;  %v1252_v40 = vpack.c.bf16 %v1138_v48, %v3111_v16 }
 0x15d   : > { %2373 = vrcp.f32 %v1093_v27  ;;  %v1154_v38 = vrot.slane %v1138_v48, 7 }
 0x15e   : > { %v2370_v45 = vpop.eup %2369  ;;  %2375 = vrcp.f32 %v1094_v33  ;;  %2184 = vmatprep.mubr.msk.bf16.mxu0 %vm2677_vm6, %v1948_v9  ;;  %v1195_v13 = vsel %vm520_vm1, %v1185_v18, %v1186_v6 }
 0x15f   : > { %v1139_v53 = vmul.f32 %v2370_v45, %v3016_v36  ;;  %v1163_v14 = vsel %vm487_vm0, %v1153_v20, %v1154_v38 }
 0x160   : > { %v2372_v57 = vpop.eup %2371  ;;  %v1920_v17 = vpack.c.bf16 %v1163_v14, %v1164_v32 }
 0x161   : > { %v1155_v61 = vrot.slane %v1139_v53, 7  ;;  %v1187_v63 = vrot.slane %v1139_v53, 1  ;;  %v1140_v2 = vmul.f32 %v2372_v57, %v3025_v43 }
 0x163   : > { %v1156_v4 = vrot.slane %v1140_v2, 7  ;;  %v1188_v5 = vrot.slane %v1140_v2, 1  ;;  %v1194_v11 = vsel %vm520_vm1, %v1186_v6, %v1187_v63  ;;  %v1253_v55 = vpack.c.bf16 %v1140_v2, %v1139_v53  ;;  %v2379_v2 = vld [vmem:[%s2518_s28 + $0x10] sm:$0xff] }
 0x164   : > { %v1952_v8 = vpack.c.bf16 %v1194_v11, %v1195_v13  ;;  %v1162_v16 = vsel %vm487_vm0, %v1154_v38, %v1155_v61  ;;  %v2380_v11 = vld [vmem:[%s2518_s28 + $0x18] sm:$0xff] }
 0x165   : > { %v1193_v36 = vsel %vm520_vm1, %v1187_v63, %v1188_v5  ;;  %v1161_v1 = vsel %vm487_vm0, %v1155_v61, %v1156_v4 }
 0x166   : > { %2185 = vmatmul.mubr.msk.bf16.gmra.mrb[40].mxu0 %vm2677_vm6, %v1952_v8  ;;  %v1924_v43 = vpack.c.bf16 %v1161_v1, %v1162_v16 }
 0x167   : > { %v2374_v18 = vpop.eup %2373 }
 0x168   : > { %v2376_v20 = vpop.eup %2375  ;;  %v1141_v3 = vmul.f32 %v2374_v18, %v3054_v26 }
 0x169   : > { %v1142_v48 = vmul.f32 %v2376_v20, %v3069_v47 }
 0x16a   : > { %v1189_v56 = vrot.slane %v1141_v3, 1  ;;  %v1157_v27 = vrot.slane %v1141_v3, 7 }
 0x16b   : > { %v1158_v25 = vrot.slane %v1142_v48, 7  ;;  %v1190_v32 = vrot.slane %v1142_v48, 1  ;;  %v1254_v33 = vpack.c.bf16 %v1142_v48, %v1141_v3  ;;  %v2381_v3 = vld [vmem:[%s2518_s28 + $0x20] sm:$0xff] }
 0x16c   : > { %v1192_v9 = vsel %vm520_vm1, %v1188_v5, %v1189_v56  ;;  %v1160_v6 = vsel %vm487_vm0, %v1156_v4, %v1157_v27 }
 0x16d   : > { %v1174_v38 = vsel %vm487_vm0, %v1158_v25, %v1143_v24  ;;  %v1956_v45 = vpack.c.bf16 %v1192_v9, %v1193_v36  ;;  %v1191_v26 = vsel %vm520_vm1, %v1189_v56, %v1190_v32  ;;  %v1206_v47 = vsel %vm520_vm1, %v1190_v32, %v1175_v15 }
 0x16e   : > { %v1900_v13 = vpack.c.bf16 %v2954_v31, %v1174_v38  ;;  %v1960_v53 = vpack.c.bf16 %v1206_v47, %v1191_v26  ;;  %v1159_v14 = vsel %vm487_vm0, %v1157_v27, %v1158_v25  ;;  %v2382_v27 = vld [vmem:[%s2518_s28 + $0x28] sm:$0xff]  ;;  %v2383_v47 = vld [vmem:[%s2518_s28 + $0x30] sm:$0xff] }
 0x16f   : > { %2188 = vmatprep.mubr.msk.bf16.mxu0 %vm2677_vm6, %v1956_v45  ;;  %v1928_v57 = vpack.c.bf16 %v1159_v14, %v1160_v6  ;;  %v2384_v14 = vld [vmem:[%s2518_s28 + $0x38] sm:$0xff] }
 0x170   : > { %1901 = vmatmul.mubr.msk.bf16.vlgmr.msra.gmra.mrb[16].mxu1 %vm2668_vm5, %v1900_v13  ;;  %2189 = vmatmul.mubr.msk.bf16.gmra.mrb[44].mxu0 %vm2677_vm6, %v1960_v53 }
 0x171   : > { %1495 = vmatprep.mubr.bf16.mxu1 %v1248_v10 }
 0x178   : > { %1905 = vmatmul.mubr.msk.bf16.gmra.mrb[20].mxu1 %vm2668_vm5, %v1904_v52 }
 0x179   : > { %1503 = vmatprep.mubr.bf16.mxu1 %v1249_v50 }
 0x180   : > { %1909 = vmatmul.mubr.msk.bf16.gmra.mrb[24].mxu1 %vm2668_vm5, %v1908_v12 }
 0x181   : > { %1511 = vmatprep.mubr.bf16.mxu1 %v1250_v0 }
 0x188   : > { %1913 = vmatmul.mubr.msk.bf16.gmra.mrb[28].mxu1 %vm2668_vm5, %v1912_v54 }
 0x189   : > { %1519 = vmatprep.mubr.bf16.mxu1 %v1251_v51 }
 0x190   : > { %1917 = vmatmul.mubr.msk.bf16.gmra.mrb[32].mxu1 %vm2668_vm5, %v1916_v42 }
 0x191   : > { %1527 = vmatprep.mubr.bf16.mxu1 %v1252_v40 }
 0x198   : > { %1921 = vmatmul.mubr.msk.bf16.gmra.mrb[36].mxu1 %vm2668_vm5, %v1920_v17 }
 0x199   : > { %1535 = vmatprep.mubr.bf16.mxu1 %v1253_v55 }
 0x1a0   : > { %1925 = vmatmul.mubr.msk.bf16.gmra.mrb[40].mxu1 %vm2668_vm5, %v1924_v43 }
 0x1a1   : > { %1543 = vmatprep.mubr.bf16.mxu1 %v1254_v33 }
 0x1a8   : > { %1929 = vmatmul.mubr.msk.bf16.gmra.mrb[44].mxu1 %vm2668_vm5, %v1928_v57 }
 0x21a   : > { %v2178_v28 = vpop.f32.mrb[32].mxu0 }
 0x21b   : > { %v1586_v29 = vpop.f32.mrb[33].mxu0 }
 0x21c   : > { %v2179_v60 = vpop.f32.mrb[34].mxu0 }
 0x21d   : > { %v1589_v24 = vpop.f32.mrb[35].mxu0 }
 0x229   : > { %v2182_v15 = vpop.f32.mrb[36].mxu0 }
 0x22a   : > { %v1602_v31 = vpop.f32.mrb[37].mxu0 }
 0x22b   : > { %v2183_v37 = vpop.f32.mrb[38].mxu0 }
 0x22c   : > { %v1605_v44 = vpop.f32.mrb[39].mxu0 }
 0x239   : > { %v3202_v10 = vpop.f32.mrb[40].mxu0 }
 0x23a   : > { %v3204_v41 = vpop.f32.mrb[41].mxu0 }
 0x23b   : > { %v3206_v19 = vpop.f32.mrb[42].mxu0 }
 0x23c   : > { %v3208_v49 = vpop.f32.mrb[43].mxu0 }
 0x243   : > { %v2064_v21 = vpop.f32.mrb[16].mxu1  ;;  %v3210_v22 = vpop.f32.mrb[44].mxu0 }
 0x244   : > { %v2065_v52 = vpop.f32.mrb[17].mxu1  ;;  %v3212_v50 = vpop.f32.mrb[45].mxu0 }
 0x245   : > { %v2066_v58 = vadd.f32 %v2065_v52, %v2064_v21  ;;  %v2067_v62 = vpop.f32.mrb[18].mxu1  ;;  %v3214_v7 = vpop.f32.mrb[46].mxu0  ;;  %v2385_v21 = vld [vmem:[%s2518_s28 + $0x40] sm:$0xff] }
 0x246   : > { %v2068_v12 = vpop.f32.mrb[19].mxu1  ;;  %v3216_v35 = vpop.f32.mrb[47].mxu0 }
 0x247   : > { %v1587_v0 = vadd.f32 %v2066_v58, %v1586_v29  ;;  %v2069_v30 = vadd.f32 %v2068_v12, %v2067_v62  ;;  %v2386_v58 = vld [vmem:[%s2518_s28 + $0x48] sm:$0xff] }
 0x249   : > { %v1649_v46 = vadd.f32 %v2377_v39, %v1587_v0  ;;  %v1590_v54 = vadd.f32 %v2069_v30, %v1589_v24 }
 0x24b   : > { %1665 = vst [vmem:[%s3223_s14] sm:$0xff] %v1649_v46  ;;  %v1650_v51 = vadd.f32 %v2378_v59, %v1590_v54  ;;  %v2070_v23 = vpop.f32.mrb[20].mxu1  ;;  %v2387_v59 = vld [vmem:[%s2518_s28 + $0x50] sm:$0xff] }
 0x24c   : > { %v2071_v34 = vpop.f32.mrb[21].mxu1 }
 0x24d   : > { %1666 = vst [vmem:[%s3223_s14 + $0x8] sm:$0xff] %v1650_v51  ;;  %v2072_v42 = vadd.f32 %v2071_v34, %v2070_v23  ;;  %v2073_v40 = vpop.f32.mrb[22].mxu1  ;;  %v2388_v23 = vld [vmem:[%s2518_s28 + $0x58] sm:$0xff] }
 0x24e   : > { %v2074_v17 = vpop.f32.mrb[23].mxu1 }
 0x24f   : > { %v1595_v61 = vadd.f32 %v2178_v28, %v2072_v42  ;;  %v2075_v63 = vadd.f32 %v2074_v17, %v2073_v40 }
 0x251   : > { %v1651_v4 = vadd.f32 %v2379_v2, %v1595_v61  ;;  %v1598_v5 = vadd.f32 %v2179_v60, %v2075_v63 }
 0x253   : > { %1667 = vst [vmem:[%s3223_s14 + $0x10] sm:$0xff] %v1651_v4  ;;  %v1652_v55 = vadd.f32 %v2380_v11, %v1598_v5  ;;  %v2076_v8 = vpop.f32.mrb[24].mxu1  ;;  %v2389_v4 = vld [vmem:[%s2518_s28 + $0x60] sm:$0xff]  ;;  %v2390_v11 = vld [vmem:[%s2518_s28 + $0x68] sm:$0xff] }
 0x254   : > { %v2077_v16 = vpop.f32.mrb[25].mxu1 }
 0x255   : > { %1668 = vst [vmem:[%s3223_s14 + $0x18] sm:$0xff] %v1652_v55  ;;  %v2078_v36 = vadd.f32 %v2077_v16, %v2076_v8  ;;  %v2079_v1 = vpop.f32.mrb[26].mxu1 }
 0x256   : > { %v2080_v43 = vpop.f32.mrb[27].mxu1 }
 0x257   : > { %v1603_v18 = vadd.f32 %v2078_v36, %v1602_v31  ;;  %v2081_v20 = vadd.f32 %v2080_v43, %v2079_v1 }
 0x259   : > { %v1653_v48 = vadd.f32 %v2381_v3, %v1603_v18  ;;  %v1606_v56 = vadd.f32 %v2081_v20, %v1605_v44  ;;  %v2391_v20 = vld [vmem:[%s2518_s28 + $0x70] sm:$0xff] }
 0x25b   : > { %1669 = vst [vmem:[%s3223_s14 + $0x20] sm:$0xff] %v1653_v48  ;;  %v1654_v25 = vadd.f32 %v2382_v27, %v1606_v56  ;;  %v2082_v32 = vpop.f32.mrb[28].mxu1 }
 0x25c   : > { %v2083_v33 = vpop.f32.mrb[29].mxu1 }
 0x25d   : > { %1670 = vst [vmem:[%s3223_s14 + $0x28] sm:$0xff] %v1654_v25  ;;  %v2084_v9 = vadd.f32 %v2083_v33, %v2082_v32  ;;  %v2085_v6 = vpop.f32.mrb[30].mxu1 }
 0x25e   : > { %v2086_v38 = vpop.f32.mrb[31].mxu1 }
 0x25f   : > { %v1611_v45 = vadd.f32 %v2182_v15, %v2084_v9  ;;  %v2087_v26 = vadd.f32 %v2086_v38, %v2085_v6 }
 0x261   : > { %v1655_v13 = vadd.f32 %v2383_v47, %v1611_v45  ;;  %v1614_v53 = vadd.f32 %v2183_v37, %v2087_v26 }
 0x263   : > { %1671 = vst [vmem:[%s3223_s14 + $0x30] sm:$0xff] %v1655_v13  ;;  %v1656_v57 = vadd.f32 %v2384_v14, %v1614_v53  ;;  %v2088_v28 = vpop.f32.mrb[32].mxu1 }
 0x264   : > { %v2089_v29 = vpop.f32.mrb[33].mxu1 }
 0x265   : > { %1672 = vst [vmem:[%s3223_s14 + $0x38] sm:$0xff] %v1656_v57  ;;  %v2090_v60 = vadd.f32 %v2089_v29, %v2088_v28  ;;  %v2091_v24 = vpop.f32.mrb[34].mxu1 }
 0x266   : > { %v2092_v31 = vpop.f32.mrb[35].mxu1 }
 0x267   : > { %v1619_v44 = vadd.f32 %v2090_v60, %v3204_v41  ;;  %v2093_v15 = vadd.f32 %v2092_v31, %v2091_v24 }
 0x269   : > { %v1657_v52 = vadd.f32 %v2385_v21, %v1619_v44  ;;  %v1622_v37 = vadd.f32 %v2093_v15, %v3208_v49 }
 0x26b   : > { %1673 = vst [vmem:[%s3223_s14 + $0x40] sm:$0xff] %v1657_v52  ;;  %v1658_v62 = vadd.f32 %v2386_v58, %v1622_v37  ;;  %v2094_v12 = vpop.f32.mrb[36].mxu1 }
 0x26c   : > { %v2095_v0 = vpop.f32.mrb[37].mxu1 }
 0x26d   : > { %1674 = vst [vmem:[%s3223_s14 + $0x48] sm:$0xff] %v1658_v62  ;;  %v2096_v30 = vadd.f32 %v2095_v0, %v2094_v12  ;;  %v2097_v39 = vpop.f32.mrb[38].mxu1 }
 0x26e   : > { %v2098_v46 = vpop.f32.mrb[39].mxu1 }
 0x26f   : > { %v1627_v41 = vadd.f32 %v3202_v10, %v2096_v30  ;;  %v2099_v54 = vadd.f32 %v2098_v46, %v2097_v39 }
 0x271   : > { %v1659_v51 = vadd.f32 %v2387_v59, %v1627_v41  ;;  %v1630_v49 = vadd.f32 %v3206_v19, %v2099_v54 }
 0x273   : > { %1675 = vst [vmem:[%s3223_s14 + $0x50] sm:$0xff] %v1659_v51  ;;  %v1660_v34 = vadd.f32 %v2388_v23, %v1630_v49  ;;  %v2100_v42 = vpop.f32.mrb[40].mxu1 }
 0x274   : > { %v2101_v40 = vpop.f32.mrb[41].mxu1 }
 0x275   : > { %1676 = vst [vmem:[%s3223_s14 + $0x58] sm:$0xff] %v1660_v34  ;;  %v2102_v17 = vadd.f32 %v2101_v40, %v2100_v42  ;;  %v2103_v61 = vpop.f32.mrb[42].mxu1 }
 0x276   : > { %v2104_v63 = vpop.f32.mrb[43].mxu1 }
 0x277   : > { %v1635_v10 = vadd.f32 %v2102_v17, %v3212_v50  ;;  %v2105_v2 = vadd.f32 %v2104_v63, %v2103_v61 }
 0x279   : > { %v1661_v5 = vadd.f32 %v2389_v4, %v1635_v10  ;;  %v1638_v19 = vadd.f32 %v2105_v2, %v3216_v35  ;;  %v2392_v35 = vld [vmem:[%s2518_s28 + $0x78] sm:$0xff] }
 0x27b   : > { %1677 = vst [vmem:[%s3223_s14 + $0x60] sm:$0xff] %v1661_v5  ;;  %v1662_v55 = vadd.f32 %v2390_v11, %v1638_v19  ;;  %v2106_v8 = vpop.f32.mrb[44].mxu1 }
 0x27c   : > { %v2107_v16 = vpop.f32.mrb[45].mxu1 }
 0x27d   : > { %1678 = vst [vmem:[%s3223_s14 + $0x68] sm:$0xff] %v1662_v55  ;;  %v2108_v36 = vadd.f32 %v2107_v16, %v2106_v8  ;;  %v2109_v1 = vpop.f32.mrb[46].mxu1 }
 0x27e   : > { %v2110_v43 = vpop.f32.mrb[47].mxu1 }
 0x27f   : > { %v1643_v50 = vadd.f32 %v3210_v22, %v2108_v36  ;;  %v2111_v18 = vadd.f32 %v2110_v43, %v2109_v1 }
 0x281   : > { %v1663_v3 = vadd.f32 %v2391_v20, %v1643_v50  ;;  %v1646_v48 = vadd.f32 %v3214_v7, %v2111_v18 }
 0x283   : > { %1679 = vst [vmem:[%s3223_s14 + $0x70] sm:$0xff] %v1663_v3  ;;  %v1664_v56 = vadd.f32 %v2392_v35, %v1646_v48 }
 0x285   : > { %1680 = vst [vmem:[%s3223_s14 + $0x78] sm:$0xff] %v1664_v56 }
 0x286 PF: > { %s17_s24 = sadd.s32 1, %s2399_s24  }
 0x287   : > { %p14_p4 = scmp.ge.s32.totalorder %s17_s24, 4  }
 0x289   :  { %16 = sbr.rel (!%p14_p4) target bundleno = 1 (0x1), region = 78 }

</bundles_post_ra>
